<compile_context>
chip_gen: v7x
topology: tpu7x:2x2x1
jax: 0.10.0
libtpu: 0.0.40
codegen_flags: <defaults>
</compile_context>

<pallas_src>
import jax
import jax.numpy as jnp
from jax.experimental import pallas as pl
from jax.experimental.pallas import tpu as pltpu


def _round_up(x: int, m: int) -> int:
    return ((x + m - 1) // m) * m


def _cdiv(a: int, b: int) -> int:
    return (a + b - 1) // b


def _hw_info():
    """Best-effort chip query (all failures fall back to conservative values)."""
    vmem_cap = 64 * 1024 * 1024
    try:
        vmem_cap = int(pltpu.get_tpu_info().vmem_capacity_bytes)
    except Exception:
        pass
    kind = ""
    try:
        kind = jax.devices()[0].device_kind.lower()
    except Exception:
        pass
    is_v7 = "v7" in kind
    has_int_mxu = ("v5" in kind) or ("v6" in kind)  # v7x MXU is bf16/fp8 only
    prefer_bf16 = ("v6" in kind) or is_v7           # native 256x256 bf16 MXU
    return vmem_cap, is_v7, has_int_mxu, prefer_bf16


def _pick_tile(dim_aligned: int, want: int, align: int) -> int:
    """Pick a tile <= want that (preferably) divides dim_aligned exactly."""
    want = max(align, min(_round_up(want, align), dim_aligned))
    lo = max(align, (want // 2) // align * align)
    for t in range(want, lo - 1, -align):
        if dim_aligned % t == 0:
            return t
    # No clean divisor in [want/2, want]: balance tiles so padding is minimal.
    n_tiles = _cdiv(dim_aligned, want)
    return max(align, _round_up(_cdiv(dim_aligned, n_tiles), align))


def _make_bmm_kernel(acc_dtype, compute_dtype, acc_in_out, round_to_int):
    """Tiled bmm kernel. Refs are 2-D (batch dim squeezed by the BlockSpec)."""

    def _cast(a, b):
        if compute_dtype is not None:
            # In-kernel cast keeps the narrow-dtype MXU path fused (VPU slack),
            # instead of a separate XLA cast op in the wrapper.
            a = a.astype(compute_dtype)
            b = b.astype(compute_dtype)
        return a, b

    if acc_in_out:
        # out dtype == accumulator dtype: accumulate directly into the resident
        # output block (its block index ignores k, K axis is "arbitrary").
        def kernel(x1_ref, x2_ref, o_ref):
            @pl.when(pl.program_id(3) == 0)
            def _init():
                o_ref[...] = jnp.zeros_like(o_ref)

            a, b = _cast(x1_ref[...], x2_ref[...])
            o_ref[...] += jnp.dot(a, b, preferred_element_type=acc_dtype)

        return kernel

    def kernel(x1_ref, x2_ref, o_ref, acc_ref):
        @pl.when(pl.program_id(3) == 0)
        def _init():
            acc_ref[...] = jnp.zeros_like(acc_ref)

        a, b = _cast(x1_ref[...], x2_ref[...])
        acc_ref[...] += jnp.dot(a, b, preferred_element_type=acc_dtype)

        @pl.when(pl.program_id(3) == pl.num_programs(3) - 1)
        def _finalize():
            acc = acc_ref[...]
            if round_to_int:
                acc = jnp.round(acc)
            o_ref[...] = acc.astype(o_ref.dtype)

    return kernel


def quant_matmul_pallas(
    x1: jax.Array,
    x2: jax.Array,
    *,
    tm: int | None = None,
    tn: int | None = None,
    tk: int | None = None,
    use_bf16_mxu: bool | None = None,
) -> jax.Array:
    """Pallas tiled bmm: x1 (B,M,K) @ x2 (B,K,N) -> (B,M,N)."""
    assert x1.ndim == 3 and x2.ndim == 3, "bmm expects 3-D inputs"
    B, M, K = x1.shape
    B2, K2, N = x2.shape
    assert B == B2 and K == K2, f"shape mismatch: {x1.shape} x {x2.shape}"

    vmem_cap, is_v7, has_int_mxu, prefer_bf16 = _hw_info()

    is_int = jnp.issubdtype(x1.dtype, jnp.integer) and jnp.issubdtype(
        x2.dtype, jnp.integer
    )
    round_to_int = False
    if is_int:
        out_dtype = jnp.int32
        if has_int_mxu:
            # Quantized path: int8 x int8 -> int32 on the MXU (v5e/v6e).
            acc_dtype = jnp.int32
            compute_dtype = None
        else:
            # v7x (or unknown chip): no integer MXU datapath — compute in f32.
            # TODO(synk): exact only while |partial sums| < 2^24 (K <~ 1000 for
            # int8 operands); use fp8/dequant-to-bf16 with scales for larger K.
            acc_dtype = jnp.float32
            compute_dtype = jnp.float32
            round_to_int = True
    else:
        out_dtype = jnp.result_type(x1.dtype, x2.dtype)
        acc_dtype = jnp.float32
        if use_bf16_mxu is None:
            use_bf16_mxu = (
                prefer_bf16
                and x1.dtype == jnp.float32
                and x2.dtype == jnp.float32
            )
        compute_dtype = (
            jnp.bfloat16
            if (use_bf16_mxu and jnp.dtype(x1.dtype).itemsize > 2)
            else None
        )

    acc_in_out = jnp.dtype(out_dtype) == jnp.dtype(acc_dtype)

    # Layout alignments: tm is the sublane axis of x1/out -> dtype packing;
    # tn/tk are lane axes -> multiples of 128.
    sub_m = max(8, 32 // jnp.dtype(x1.dtype).itemsize)
    in_itemsize = max(jnp.dtype(x1.dtype).itemsize, jnp.dtype(x2.dtype).itemsize)
    narrow = is_int or in_itemsize <= 2 or compute_dtype is jnp.bfloat16

    if tm is None:
        tm = 512
    if tn is None:
        tn = 512  # multiple of 256 -> whole 256x256 MXU passes on v6e/v7x
    if tk is None:
        tk = 2048 if narrow else 1024

    Ma, Na, Ka = _round_up(M, sub_m), _round_up(N, 128), _round_up(K, 128)
    tm = _pick_tile(Ma, tm, sub_m)
    tn = _pick_tile(Na, tn, 128)
    tk = _pick_tile(Ka, tk, 128)

    # Per-generation VMEM budget (headroom for Mosaic internal scratch).
    budget = int(min(vmem_cap * 0.8, 100 * 1024 * 1024))

    def _working_set(tm_, tn_, tk_):
        in1 = tm_ * tk_ * jnp.dtype(x1.dtype).itemsize
        in2 = tk_ * tn_ * jnp.dtype(x2.dtype).itemsize
        out = tm_ * tn_ * jnp.dtype(out_dtype).itemsize
        acc = 0 if acc_in_out else tm_ * tn_ * jnp.dtype(acc_dtype).itemsize
        return 2 * (in1 + in2 + out) + acc

    # Clamp tiles to the budget (not the budget to the tiles).
    while _working_set(tm, tn, tk) > int(budget * 0.9):
        if tk > 512 and tk >= max(tm, tn):
            tk = _pick_tile(Ka, tk // 2, 128)
        elif tm >= tn and tm > sub_m:
            tm = _pick_tile(Ma, tm // 2, sub_m)
        elif tn > 128:
            tn = _pick_tile(Na, tn // 2, 128)
        else:
            break

    # v7x has 2 TensorCores sharded over the parallel axes — avoid a 1-tile grid.
    if is_v7 and B * _cdiv(Ma, tm) * _cdiv(Na, tn) < 2 and Ma >= 2 * sub_m:
        tm = _pick_tile(Ma, max(sub_m, Ma // 2), sub_m)

    Mp, Np, Kp = _round_up(Ma, tm), _round_up(Na, tn), _round_up(Ka, tk)
    if (Mp, Kp) != (M, K):
        x1 = jnp.pad(x1, ((0, 0), (0, Mp - M), (0, Kp - K)))
    if (Kp, Np) != (K, N):
        x2 = jnp.pad(x2, ((0, 0), (0, Kp - K), (0, Np - N)))

    grid = (B, Mp // tm, Np // tn, Kp // tk)
    n_m, n_n = grid[1], grid[2]

    # HBM traffic including K-sweep refetch of both operands.
    cost = pl.CostEstimate(
        flops=2 * B * M * N * K,
        transcendentals=0,
        bytes_accessed=(
            B * Mp * Kp * jnp.dtype(x1.dtype).itemsize * n_n
            + B * Kp * Np * jnp.dtype(x2.dtype).itemsize * n_m
            + B * Mp * Np * jnp.dtype(out_dtype).itemsize
        ),
    )

    scratch = [] if acc_in_out else [pltpu.VMEM((tm, tn), acc_dtype)]

    out = pl.pallas_call(
        _make_bmm_kernel(acc_dtype, compute_dtype, acc_in_out, round_to_int),
        out_shape=jax.ShapeDtypeStruct((B, Mp, Np), out_dtype),
        grid_spec=pltpu.PrefetchScalarGridSpec(
            num_scalar_prefetch=0,
            grid=grid,
            in_specs=[
                # Batch dim squeezed (None) -> kernel sees 2-D tiles.
                pl.BlockSpec((None, tm, tk), lambda b, i, j, k: (b, i, k)),
                pl.BlockSpec((None, tk, tn), lambda b, i, j, k: (b, k, j)),
            ],
            out_specs=pl.BlockSpec((None, tm, tn), lambda b, i, j, k: (b, i, j)),
            scratch_shapes=scratch,
        ),
        compiler_params=pltpu.CompilerParams(
            dimension_semantics=("parallel", "parallel", "parallel", "arbitrary"),
            vmem_limit_bytes=int(budget),
        ),
        cost_estimate=cost,
    )(x1, x2)

    if (Mp, Np) != (M, N):
        out = out[:, :M, :N]
    return out


def quant_matmul_forward(x1: jax.Array, x2: jax.Array, **kwargs) -> jax.Array:
    """QuantMatMul.forward equivalent: torch.bmm(x1, x2) with a size dispatch."""
    assert x1.ndim == 3 and x2.ndim == 3
    _, M, K = x1.shape
    N = x2.shape[2]
    # Tiny problems: per-grid-step overhead and masked narrow stores dominate;
    # plain XLA einsum is faster than any Pallas kernel here.
    if M * N * K < (1 << 18):
        if jnp.issubdtype(x1.dtype, jnp.integer) and jnp.issubdtype(
            x2.dtype, jnp.integer
        ):
            return jnp.einsum(
                "bmk,bkn->bmn", x1.astype(jnp.int32), x2.astype(jnp.int32)
            )
        return jnp.einsum("bmk,bkn->bmn", x1, x2)
    return quant_matmul_pallas(x1, x2, **kwargs)


# TODO(synk): UniformAffineQuantizer (quant_x1/quant_x2) is not applied in
# forward() (use_act_quant=False), so it is intentionally not translated; the
# int8 fast path above is the hook for externally pre-quantized activations.


if __name__ == "__main__":
    key = jax.random.PRNGKey(0)
    k1, k2, k3, k4, k5, k6 = jax.random.split(key, 6)

    # 1) f32 bmm with a multi-step K reduction (tk forced below K), strict MXU.
    B, M, K, N = 2, 256, 1024, 256
    x1 = jax.random.normal(k1, (B, M, K), dtype=jnp.float32)
    x2 = jax.random.normal(k2, (B, K, N), dtype=jnp.float32)
    out = jax.block_until_ready(
        quant_matmul_pallas(x1, x2, tk=256, use_bf16_mxu=False)
    )
    ref = jnp.einsum("bmk,bkn->bmn", x1, x2)
    assert out.shape == (B, M, N)
    assert jnp.allclose(out, ref, atol=1e-2, rtol=1e-2), "pallas bmm mismatch"

    # 1b) default (auto) tiles + auto bf16-MXU on v6e/v7x — looser tolerance.
    out_auto = jax.block_until_ready(quant_matmul_pallas(x1, x2))
    assert jnp.allclose(out_auto, ref, atol=2.0, rtol=5e-2), "auto path mismatch"

    # 2) bf16 inputs (exercises the separate f32-accumulator finalize path).
    xb1 = x1[:, :128, :512].astype(jnp.bfloat16)
    xb2 = x2[:, :512, :128].astype(jnp.bfloat16)
    outb = jax.block_until_ready(quant_matmul_pallas(xb1, xb2))
    refb = jnp.einsum(
        "bmk,bkn->bmn", xb1.astype(jnp.float32), xb2.astype(jnp.float32)
    )
    assert outb.dtype == jnp.bfloat16
    assert jnp.allclose(
        outb.astype(jnp.float32), refb, atol=2.0, rtol=5e-2
    ), "bf16 bmm mismatch"

    # 3) non-(8,128)-aligned dims (exercises pad + slice).
    Bb, Mm, Kk, Nn = 2, 40, 72, 56
    y1 = jax.random.normal(k3, (Bb, Mm, Kk), dtype=jnp.float32)
    y2 = jax.random.normal(k4, (Bb, Kk, Nn), dtype=jnp.float32)
    out2 = jax.block_until_ready(quant_matmul_pallas(y1, y2, use_bf16_mxu=False))
    ref2 = jnp.einsum("bmk,bkn->bmn", y1, y2)
    assert jnp.allclose(out2, ref2, atol=1e-2, rtol=1e-2), "padded bmm mismatch"

    # 4) int8 path (externally pre-quantized activations), exact comparison.
    q1 = jax.random.randint(k5, (2, 64, 256), -127, 128, dtype=jnp.int32).astype(
        jnp.int8
    )
    q2 = jax.random.randint(k6, (2, 256, 128), -127, 128, dtype=jnp.int32).astype(
        jnp.int8
    )
    out3 = jax.block_until_ready(quant_matmul_pallas(q1, q2))
    ref3 = jnp.einsum("bmk,bkn->bmn", q1.astype(jnp.int32), q2.astype(jnp.int32))
    assert out3.dtype == jnp.int32
    assert jnp.array_equal(out3, ref3), "int8 bmm mismatch"

    # 5) dispatch wrapper: tiny bmm (B=2, M=8, K=32, N=8) routes to XLA einsum.
    z1 = x1[:, :8, :32]
    z2 = x2[:, :32, :8]
    out4 = jax.block_until_ready(quant_matmul_forward(z1, z2))
    ref4 = jnp.einsum("bmk,bkn->bmn", z1, z2)
    assert jnp.allclose(out4, ref4, atol=1e-4, rtol=1e-4), "dispatch mismatch"

    print("KERNEL_OK")
</pallas_src>

<mosaic_0001>
module attributes {stable_mosaic.version = 11 : i64} {
  func.func @kernel(%arg0: i32, %arg1: i32, %arg2: i32, %arg3: i32, %arg4: memref<1x256x256xf32, #tpu.memory_space<vmem>>, %arg5: memref<1x256x256xf32, #tpu.memory_space<vmem>>, %arg6: memref<1x256x256xf32, #tpu.memory_space<vmem>>) attributes {dimension_semantics = [#tpu.dimension_semantics<parallel>, #tpu.dimension_semantics<parallel>, #tpu.dimension_semantics<parallel>, #tpu.dimension_semantics<arbitrary>], iteration_bounds = array<i64: 2, 1, 1, 4>, scalar_prefetch = 0 : i64, scratch_operands = 0 : i64, tpu.core_type = #tpu.core_type<tc>, window_params = [{transform_indices = @transform_0, window_bounds = array<i64: 1, 256, 256>}, {transform_indices = @transform_1, window_bounds = array<i64: 1, 256, 256>}, {transform_indices = @transform_2, window_bounds = array<i64: 1, 256, 256>}]} {
    %c0_i32 = arith.constant 0 : i32
    %0 = arith.cmpi eq, %arg3, %c0_i32 : i32
    %1 = arith.extui %0 : i1 to i32
    %c0_i32_0 = arith.constant 0 : i32
    %2 = arith.cmpi ne, %1, %c0_i32_0 : i32
    scf.if %2 {
      %cst_12 = arith.constant 0.000000e+00 : f32
      %14 = vector.broadcast %cst_12 : f32 to vector<256x256xf32>
      %c0_13 = arith.constant 0 : index
      %c0_14 = arith.constant 0 : index
      %c0_15 = arith.constant 0 : index
      %15 = vector.load %arg6[%c0_13, %c0_14, %c0_15] : memref<1x256x256xf32, #tpu.memory_space<vmem>>, vector<1x256x256xf32>
      %16 = vector.shape_cast %15 : vector<1x256x256xf32> to vector<256x256xf32>
      %17 = vector.shape_cast %14 : vector<256x256xf32> to vector<1x256x256xf32>
      tpu.vector_store %arg6[%c0_13, %c0_14, %c0_15], %17 {strides = array<i32>} : memref<1x256x256xf32, #tpu.memory_space<vmem>>, vector<1x256x256xf32>,
    } else {
    }
    %c0 = arith.constant 0 : index
    %c0_1 = arith.constant 0 : index
    %c0_2 = arith.constant 0 : index
    %3 = vector.load %arg4[%c0, %c0_1, %c0_2] : memref<1x256x256xf32, #tpu.memory_space<vmem>>, vector<1x256x256xf32>
    %4 = vector.shape_cast %3 : vector<1x256x256xf32> to vector<256x256xf32>
    %c0_3 = arith.constant 0 : index
    %c0_4 = arith.constant 0 : index
    %c0_5 = arith.constant 0 : index
    %5 = vector.load %arg5[%c0_3, %c0_4, %c0_5] : memref<1x256x256xf32, #tpu.memory_space<vmem>>, vector<1x256x256xf32>
    %6 = vector.shape_cast %5 : vector<1x256x256xf32> to vector<256x256xf32>
    %c0_6 = arith.constant 0 : index
    %c0_7 = arith.constant 0 : index
    %c0_8 = arith.constant 0 : index
    %7 = vector.load %arg6[%c0_6, %c0_7, %c0_8] : memref<1x256x256xf32, #tpu.memory_space<vmem>>, vector<1x256x256xf32>
    %8 = vector.shape_cast %7 : vector<1x256x256xf32> to vector<256x256xf32>
    %cst = arith.constant dense<0.000000e+00> : vector<256x256xf32>
    %9 = tpu.matmul %4, %6, %cst {dimension_numbers = #tpu.dot_dimension_numbers<[1], [0], [0], [1], [0, 0, 1, 1], [], []>} : vector<256x256xf32>, vector<256x256xf32>, vector<256x256xf32> -> vector<256x256xf32>
    %10 = arith.addf %8, %9 : vector<256x256xf32>
    %c0_9 = arith.constant 0 : index
    %c0_10 = arith.constant 0 : index
    %c0_11 = arith.constant 0 : index
    %11 = vector.load %arg6[%c0_9, %c0_10, %c0_11] : memref<1x256x256xf32, #tpu.memory_space<vmem>>, vector<1x256x256xf32>
    %12 = vector.shape_cast %11 : vector<1x256x256xf32> to vector<256x256xf32>
    %13 = vector.shape_cast %10 : vector<256x256xf32> to vector<1x256x256xf32>
    tpu.vector_store %arg6[%c0_9, %c0_10, %c0_11], %13 {strides = array<i32>} : memref<1x256x256xf32, #tpu.memory_space<vmem>>, vector<1x256x256xf32>,
    return
  }
  func.func @transform_0(%arg0: i32, %arg1: i32, %arg2: i32, %arg3: i32) -> (i32, i32, i32) {
    %c0_i32 = arith.constant 0 : i32
    return %arg0, %arg1, %arg3 : i32, i32, i32
  }
  func.func @transform_1(%arg0: i32, %arg1: i32, %arg2: i32, %arg3: i32) -> (i32, i32, i32) {
    %c0_i32 = arith.constant 0 : i32
    return %arg0, %arg3, %arg2 : i32, i32, i32
  }
  func.func @transform_2(%arg0: i32, %arg1: i32, %arg2: i32, %arg3: i32) -> (i32, i32, i32) {
    %c0_i32 = arith.constant 0 : i32
    return %arg0, %arg1, %arg2 : i32, i32, i32
  }
}

</mosaic_0001>

<bundles_post_ra>
// kernel: tpu_custom_call.1
= control target key start
LH: loop header
LB: loop body
LE: loop exit
PB: predicated region body
PF: predicated region fallthrough
CT: control target
= control target key end

     0   :  { %s2172_s0 = inlined_call_operand.hbm [shape: f32[2,256,1024], index: 0, kind: input, shape index: {}]   ;;  %s2173_s1 = inlined_call_operand.hbm [shape: f32[2,1024,256], index: 1, kind: input, shape index: {}]   ;;  %s2174_s2 = inlined_call_operand.hbm [shape: f32[2,256,256], index: 2, kind: output, shape index: {}]  }
   0x1   :  { %2183 = sst [smem:[#allocation18_spill]] %s2172_s0 }
   0x2   :  { %7 = vsyncpa [#allocation3], 0 }
   0x3   :  { %9 = vsyncpa [#allocation3 + $0x1], 0 }
   0x4   :  { %10 = vsyncpa [#allocation6], 0 }
   0x5   :  { %12 = vsyncpa [#allocation6 + $0x1], 0 }
   0x6   :  { %13 = vsyncpa [#allocation4], 0 }
   0x7   :  { %15 = vsyncpa [#allocation4 + $0x1], 0  ;;  %s1494_s9 = smov 0   ;;  %s1496_s10 = smov 0  }
   0x8   :  { %s1498_s11 = smov 0   ;;  %s1500_s12 = smov 0  }
   0x9   :  { %s1502_s13 = smov 0   ;;  %s1504_s14 = smov 0  }
   0xa   :  { %s1506_s15 = smov 0   ;;  %s1508_s16 = smov 0  }
   0xb   :  { %s1510_s17 = smov 0   ;;  %s1512_s18 = smov 0  }
   0xc   :  { %s1514_s19 = smov 0  }
   0xd LB: > { %2184 = sst [smem:[#allocation11_spill]] %s1436_s11  ;;  %s1048_s20 = sadd.s32 4294967295, %s1468_s19   ;;  %s1468_s19 = sphi %s1514_s19, %s21_s19   ;;  %s1464_s18 = sphi %s1512_s18, %s2217_s18   ;;  %s1460_s17 = sphi %s1510_s17, %s2216_s17   ;;  %s1456_s16 = sphi %s1508_s16, %s2215_s16   ;;  %s1452_s15 = sphi %s1506_s15, %s2214_s15   ;;  %s1448_s14 = sphi %s1504_s14, %s2207_s14   ;;  %s1444_s13 = sphi %s1502_s13, %s2213_s13   ;;  %s1440_s12 = sphi %s1500_s12, %s2212_s12   ;;  %s1436_s11 = sphi %s1498_s11, %s2205_s11   ;;  %s1432_s10 = sphi %s1496_s10, %s2211_s10   ;;  %s1428_s9 = sphi %s1494_s9, %s2210_s9  }
   0xe   : > { %2185 = sst [smem:[#allocation12_spill]] %s1448_s14  ;;  %s1049_s21 = sadd.s32 4294967294, %s1468_s19  }
   0xf   : > { %s36_s22 = sadd.s32 1, %s1460_s17  ;;  %s47_s23 = sadd.s32 1, %s1464_s18 }
  0x10   : > { %p37_p0 = scmp.ge.s32.totalorder %s36_s22, 4  ;;  %s58_s24 = sadd.s32 1, %s1448_s14 }
  0x11   : > { %p65_p1 = scmp.ne.s32.totalorder %s1448_s14, %s1444_s13  ;;  %p66_p2 = scmp.eq.s32.totalorder %s1468_s19, 0 }
  0x12   : > { %s2219_s22 = smov (%p37_p0, %s36_s22), 0  ;;  %s2221_s23 = smov (!%p37_p0, %s47_s23), %s1464_s18 }
  0x13   : > { %2186 = sst [smem:[#allocation13_spill]] %s2219_s22  ;;  %s54_s25 = ssub.s32 %s1460_s17, %s2219_s22 }
  0x14   : > { %p1560_p3 = por %p66_p2, %p65_p1  ;;  %p49_p4 = scmp.ge.s32.totalorder %s2221_s23, 2 }
  0x15   : > { %p71_p5 = scmp.ne.s32.totalorder %s1444_s13, %s1440_s12  ;;  %p72_p6 = scmp.eq.s32.totalorder %s1048_s20, 0 }
  0x16   : > { %s118_s27 = sadd.s32 1, %s1436_s11  ;;  %s2223_s23 = smov (%p49_p4, %s2221_s23), 0 }
  0x17   : > { %2188 = sst [smem:[#allocation14_spill]] %s2223_s23  ;;  %p1568_p7 = por %p72_p6, %p71_p5 }
  0x18   : > { %p128_p8 = scmp.ne.s32.totalorder %s1436_s11, %s1432_s10  ;;  %s51_s29 = ssub.s32 %s1464_s18, %s2223_s23 }
  0x19   : > { %s2189_s28 = scalar_select %p1568_p7, 1, 0 }
  0x1a   : > { %p129_p9 = scmp.eq.s32.totalorder %s1048_s20, 7  ;;  %s55_s30 = sor.u32 %s54_s25, %s51_s29 }
  0x1b   : > { %p116_p10 = scmp.eq.s32.totalorder %s51_s29, 0  ;;  %p56_p11 = scmp.eq.s32.totalorder %s55_s30, 0 }
  0x1c   : > { %p1576_p12 = por %p129_p9, %p128_p8  ;;  %p134_p13 = scmp.ne.s32.totalorder %s1432_s10, %s1428_s9 }
  0x1d   : > { %s1581_s4 = scalar_select %p116_p10, %s1436_s11, %s118_s27  }
  0x1e   : > { %s2190_s3 = scalar_select %p1576_p12, 1, 0 }
  0x1f   : > { %2191 = sst [smem:[#allocation15_spill]] %s1581_s4  ;;  %p135_p0 = scmp.eq.s32.totalorder %s1049_s21, 7 }
  0x20   : > { %s1584_s5 = scalar_select %p56_p11, %s1448_s14, %s58_s24  }
  0x21   : > { %p1186_p1 = scmp.lt.s32.totalorder %s1468_s19, 8  ;;  %p1589_p2 = por %p135_p0, %p134_p13 }
  0x22   : > { %2192 = sst [smem:[#allocation16_spill]] %s1584_s5  ;;  %s1594_s7 = sand.u32 1, %s1448_s14  }
  0x23   : > { %s2193_s6 = scalar_select %p1589_p2, 1, 0 }
  0x24   : > { %s2177_s8 = sshll.u32 %s1594_s7, 9  ;;  %s1053_s12 = sshll.u32 %s1460_s17, 1 }
  0x25   : > { %2194 = sst [smem:[#allocation17_spill]] %s2193_s6  ;;  %s1054_s20 = sshll.u32 %s1464_s18, 8 }
  0x26   : > { %s159_s25 = scalar_lea.vmem [#allocation2], %s2177_s8  ;;  %s168_s27 = sadd.s32 %s1054_s20, %s1053_s12 }
  0x27   : > { %s171_s24 = sshll.u32 %s159_s25, 4  ;;  %s1055_s21 = sshll.u32 %s168_s27, 7  ;;  %s1603_s24 = int_to_ptr.vmem [resolvable:$true] %s171_s24 }
  0x28   : > { %p1607_p4 = pnand %p1186_p1, %p1560_p3  ;;  %s2196_s0 = sld [smem:[#allocation18_spill]] }
  0x29   : > { %s156_s12 = scalar_lea.sflag [#allocation3], %s1594_s7 }
  0x2a   : > { %p1284_p3 = pneg %p1607_p4 }
  0x2e   : > { %s1614_s22 = scalar_lea.hbm %s2196_s0, %s1055_s21  ;;  %s1287_s27 = scalar_lea.hbm %s2196_s0, 65536 }
  0x2f   : > { %s1282_s25 = scalar_lea.hbm %s1614_s22, 8192  ;;  %p1288_p10 = scmp.lt.u32.totalorder %s1614_s22, %s2196_s0 }
  0x30   : > { %p1283_p6 = scmp.ne.s32.totalorder %s1614_s22, %s1282_s25  ;;  %p1289_p11 = scmp.lt.u32.totalorder %s1287_s27, %s1282_s25 }
  0x31   : > { %p1291_p0 = scmp.lt.u32.totalorder %s1282_s25, %s1614_s22 }
  0x32   : > { %p1285_p8 = pnand %p1284_p3, %p1283_p6  ;;  %p1290_p13 = por %p1289_p11, %p1288_p10 }
  0x34   : > { %p1286_p9 = pneg %p1285_p8  ;;  %p1292_p1 = por %p1291_p0, %p1290_p13 }
  0x36   : > { %p1293_p5 = pnand %p1292_p1, %p1286_p9 }
  0x38   : > { %1296 = shalt.err (!%p1293_p5)
}
  0x39   : > { %s1297_s8 = scalar_lea.vmem %s1603_s24, 8192  ;;  %s1470_s26 = smov [#allocation2]  }
  0x3a   : > { %p1298_p6 = scmp.ne.s32.totalorder %s1603_s24, %s1297_s8  ;;  %s1302_s23 = sshll.u32 %s1470_s26, 4  ;;  %s1303_s23 = int_to_ptr.vmem [resolvable:$false] %s1302_s23 }
  0x3b   : > { %s1304_s21 = scalar_lea.vmem %s1303_s23, 16384  ;;  %p1305_p12 = scmp.lt.s32.totalorder %s1603_s24, %s1303_s23 }
  0x3c   : > { %p1300_p8 = pnand %p1298_p6, %p1284_p3  ;;  %p1306_p10 = scmp.lt.s32.totalorder %s1304_s21, %s1297_s8 }
  0x3e   : > { %p1301_p2 = pneg %p1300_p8  ;;  %p1307_p11 = por %p1306_p10, %p1305_p12 }
  0x40   : > { %p1308_p13 = pnand %p1307_p11, %p1301_p2 }
  0x42   : > { %1311 = shalt.err (!%p1308_p13)
}
  0x43   : > { %s1471_s25 = smov 1024   ;;  %s1472_s27 = smov 256  }
  0x44   : > { %s1473_s30 = smov 16   ;;  %p205_p12 = scmp.lt.s32.totalorder %s1468_s19, 9 }
  0x45   : > { %1178 = dma.hbm_to_vmem [thread:$0]  (!%p1607_p4), %s1614_s22, 8192, %s1603_s24, %s156_s12, %s1471_s25, %s1472_s27, %s1473_s30  }
  0x46   : > { %s1071_s8 = sshll.u32 %s1460_s17, 6  ;;  %p2197_p2 = scmp.ge.s32.totalorder %s1468_s19, 1 }
  0x47   : > { %s194_s23 = sadd.s32 %s1071_s8, %s1054_s20  ;;  %s2199_s0 = sshll.u32 %s1594_s7, 9 }
  0x48   : > { %p1651_p5 = pnand %p2197_p2, %p205_p12  ;;  %s1060_s21 = sshll.u32 %s194_s23, 7 }
  0x49   : > { %s185_s5 = scalar_lea.vmem [#allocation5], %s2199_s0  ;;  %s1662_s6 = scalar_lea.hbm %s2173_s1, %s1060_s21 }
  0x4a   : > { %s197_s14 = sshll.u32 %s185_s5, 4  ;;  %s182_s22 = scalar_lea.sflag [#allocation6], %s1594_s7  ;;  %s1664_s14 = int_to_ptr.vmem [resolvable:$true] %s197_s14 }
  0x4b   : > { %s1312_s24 = scalar_lea.hbm %s1662_s6, 8192  ;;  %s1317_s20 = scalar_lea.hbm %s2173_s1, 65536 }
  0x4c   : > { %p1313_p9 = scmp.ne.s32.totalorder %s1662_s6, %s1312_s24  ;;  %p1318_p6 = scmp.lt.u32.totalorder %s1662_s6, %s2173_s1 }
  0x4d   : > { %p1319_p8 = scmp.lt.u32.totalorder %s1317_s20, %s1312_s24  ;;  %p1321_p11 = scmp.lt.u32.totalorder %s1312_s24, %s1662_s6 }
  0x4e   : > { %p1315_p0 = pnand %p1313_p9, %p1284_p3 }
  0x4f   : > { %p1320_p10 = por %p1319_p8, %p1318_p6 }
  0x50   : > { %p1316_p1 = pneg %p1315_p0 }
  0x51   : > { %p1322_p13 = por %p1321_p11, %p1320_p10 }
  0x53   : > { %p1323_p12 = pnand %p1322_p13, %p1316_p1 }
  0x55   : > { %1326 = shalt.err (!%p1323_p12)
}
  0x56   : > { %s1327_s12 = scalar_lea.vmem %s1664_s14, 8192  ;;  %s1474_s25 = smov [#allocation5]  }
  0x57   : > { %p1328_p2 = scmp.ne.s32.totalorder %s1664_s14, %s1327_s12  ;;  %s1332_s8 = sshll.u32 %s1474_s25, 4  ;;  %s1333_s8 = int_to_ptr.vmem [resolvable:$false] %s1332_s8 }
  0x58   : > { %s1334_s23 = scalar_lea.vmem %s1333_s8, 16384  ;;  %p1335_p7 = scmp.lt.s32.totalorder %s1664_s14, %s1333_s8 }
  0x59   : > { %p1330_p9 = pnand %p1328_p2, %p1284_p3  ;;  %p1336_p6 = scmp.lt.s32.totalorder %s1334_s23, %s1327_s12 }
  0x5b   : > { %p1331_p0 = pneg %p1330_p9  ;;  %p1337_p8 = por %p1336_p6, %p1335_p7 }
  0x5d   : > { %p1338_p10 = pnand %p1337_p8, %p1331_p0 }
  0x5f   : > { %1341 = shalt.err (!%p1338_p10)
}
  0x60   : > { %1181 = dma.hbm_to_vmem [thread:$0]  (!%p1607_p4), %s1662_s6, 8192, %s1664_s14, %s182_s22, %s1472_s27, %s1472_s27, %s1473_s30  }
  0x61   : > { %209 = sbr.rel (%p1651_p5) target bundleno = 499 (0x1f3), region = 28  ;;  %s211_s21 = sand.u32 (!%p1651_p5), 1, %s1444_s13  }
  0x62   : > { %s1062_s24 = sshll.u32 (!%p1651_p5), %s211_s21, 9  ;;  %s212_s0 = scalar_lea.sflag (!%p1651_p5), [#allocation3], %s211_s21 }
  0x63   : > { %s1698_s5 = scalar_lea.vmem (!%p1651_p5), [#allocation2], %s1062_s24  ;;  %p2200_p7 = scmp.ne.s32.totalorder (!%p1651_p5), %s2189_s28, 0 }
  0x68   : > { %1415 = dma.done.wait (%p2200_p7), %s212_s0, 8192  }
  0x69   : > { %1417 = vsyncadd (%p2200_p7), %s212_s0, 4294959104  ;;  %s221_s7 = scalar_lea.sflag [#allocation6], %s211_s21  ;;  %s1704_s29 = scalar_lea.vmem [#allocation5], %s1062_s24 }
  0x6a   : > { %1419 = dma.done.wait (%p2200_p7), %s221_s7, 8192  }
  0x6b   : > { %1421 = vsyncadd (%p2200_p7), %s221_s7, 4294959104  ;;  %s247_s14 = sand.u32 1, %s1432_s10   ;;  %p1065_p4 = scmp.ne.s32.totalorder %s1452_s15, 0 }
  0x6c   : > { %s1064_s6 = sshll.u32 %s247_s14, 9  ;;  %v1475_v0 = vmov (!%p1065_p4), 0.0  }
  0x6d   : > { %s1713_s27 = scalar_lea.vmem [#allocation7], %s1064_s6  ;;  %259 = sbr.rel (%p1065_p4) target bundleno = 142 (0x8e), region = 40 }
  0x6e   : > { %260 = vst [vmem:[%s1713_s27] sm:$0xff] (!%p1065_p4), %v1475_v0  ;;  %261 = vst [vmem:[%s1713_s27 + $0x8] sm:$0xff] (!%p1065_p4), %v1475_v0 }
  0x6f   : > { %262 = vst [vmem:[%s1713_s27 + $0x10] sm:$0xff] (!%p1065_p4), %v1475_v0  ;;  %263 = vst [vmem:[%s1713_s27 + $0x18] sm:$0xff] (!%p1065_p4), %v1475_v0 }
  0x70   : > { %264 = vst [vmem:[%s1713_s27 + $0x20] sm:$0xff] (!%p1065_p4), %v1475_v0  ;;  %265 = vst [vmem:[%s1713_s27 + $0x28] sm:$0xff] (!%p1065_p4), %v1475_v0 }
  0x71   : > { %266 = vst [vmem:[%s1713_s27 + $0x30] sm:$0xff] (!%p1065_p4), %v1475_v0  ;;  %267 = vst [vmem:[%s1713_s27 + $0x38] sm:$0xff] (!%p1065_p4), %v1475_v0 }
  0x72   : > { %268 = vst [vmem:[%s1713_s27 + $0x40] sm:$0xff] (!%p1065_p4), %v1475_v0  ;;  %269 = vst [vmem:[%s1713_s27 + $0x48] sm:$0xff] (!%p1065_p4), %v1475_v0 }
  0x73   : > { %270 = vst [vmem:[%s1713_s27 + $0x50] sm:$0xff] (!%p1065_p4), %v1475_v0  ;;  %271 = vst [vmem:[%s1713_s27 + $0x58] sm:$0xff] (!%p1065_p4), %v1475_v0 }
  0x74   : > { %272 = vst [vmem:[%s1713_s27 + $0x60] sm:$0xff] %v1475_v0  ;;  %273 = vst [vmem:[%s1713_s27 + $0x68] sm:$0xff] %v1475_v0 }
  0x75   : > { %274 = vst [vmem:[%s1713_s27 + $0x70] sm:$0xff] %v1475_v0  ;;  %275 = vst [vmem:[%s1713_s27 + $0x78] sm:$0xff] %v1475_v0 }
  0x76   : > { %276 = vst [vmem:[%s1713_s27 + $0x80] sm:$0xff] %v1475_v0  ;;  %277 = vst [vmem:[%s1713_s27 + $0x88] sm:$0xff] %v1475_v0 }
  0x77   : > { %278 = vst [vmem:[%s1713_s27 + $0x90] sm:$0xff] %v1475_v0  ;;  %279 = vst [vmem:[%s1713_s27 + $0x98] sm:$0xff] %v1475_v0 }
  0x78   : > { %280 = vst [vmem:[%s1713_s27 + $0xa0] sm:$0xff] %v1475_v0  ;;  %281 = vst [vmem:[%s1713_s27 + $0xa8] sm:$0xff] %v1475_v0 }
  0x79   : > { %282 = vst [vmem:[%s1713_s27 + $0xb0] sm:$0xff] %v1475_v0  ;;  %283 = vst [vmem:[%s1713_s27 + $0xb8] sm:$0xff] %v1475_v0 }
  0x7a   : > { %284 = vst [vmem:[%s1713_s27 + $0xc0] sm:$0xff] %v1475_v0  ;;  %285 = vst [vmem:[%s1713_s27 + $0xc8] sm:$0xff] %v1475_v0 }
  0x7b   : > { %286 = vst [vmem:[%s1713_s27 + $0xd0] sm:$0xff] %v1475_v0  ;;  %287 = vst [vmem:[%s1713_s27 + $0xd8] sm:$0xff] %v1475_v0 }
  0x7c   : > { %288 = vst [vmem:[%s1713_s27 + $0xe0] sm:$0xff] %v1475_v0  ;;  %289 = vst [vmem:[%s1713_s27 + $0xe8] sm:$0xff] %v1475_v0 }
  0x7d   : > { %290 = vst [vmem:[%s1713_s27 + $0xf0] sm:$0xff] %v1475_v0  ;;  %291 = vst [vmem:[%s1713_s27 + $0xf8] sm:$0xff] %v1475_v0 }
  0x7e   : > { %292 = vst [vmem:[%s1713_s27 + $0x100] sm:$0xff] %v1475_v0  ;;  %293 = vst [vmem:[%s1713_s27 + $0x108] sm:$0xff] %v1475_v0 }
  0x7f   : > { %294 = vst [vmem:[%s1713_s27 + $0x110] sm:$0xff] %v1475_v0  ;;  %295 = vst [vmem:[%s1713_s27 + $0x118] sm:$0xff] %v1475_v0 }
  0x80   : > { %296 = vst [vmem:[%s1713_s27 + $0x120] sm:$0xff] %v1475_v0  ;;  %297 = vst [vmem:[%s1713_s27 + $0x128] sm:$0xff] %v1475_v0 }
  0x81   : > { %298 = vst [vmem:[%s1713_s27 + $0x130] sm:$0xff] %v1475_v0  ;;  %299 = vst [vmem:[%s1713_s27 + $0x138] sm:$0xff] %v1475_v0 }
  0x82   : > { %300 = vst [vmem:[%s1713_s27 + $0x140] sm:$0xff] %v1475_v0  ;;  %301 = vst [vmem:[%s1713_s27 + $0x148] sm:$0xff] %v1475_v0 }
  0x83   : > { %302 = vst [vmem:[%s1713_s27 + $0x150] sm:$0xff] %v1475_v0  ;;  %303 = vst [vmem:[%s1713_s27 + $0x158] sm:$0xff] %v1475_v0 }
  0x84   : > { %304 = vst [vmem:[%s1713_s27 + $0x160] sm:$0xff] %v1475_v0  ;;  %305 = vst [vmem:[%s1713_s27 + $0x168] sm:$0xff] %v1475_v0 }
  0x85   : > { %306 = vst [vmem:[%s1713_s27 + $0x170] sm:$0xff] %v1475_v0  ;;  %307 = vst [vmem:[%s1713_s27 + $0x178] sm:$0xff] %v1475_v0 }
  0x86   : > { %308 = vst [vmem:[%s1713_s27 + $0x180] sm:$0xff] %v1475_v0  ;;  %309 = vst [vmem:[%s1713_s27 + $0x188] sm:$0xff] %v1475_v0 }
  0x87   : > { %310 = vst [vmem:[%s1713_s27 + $0x190] sm:$0xff] %v1475_v0  ;;  %311 = vst [vmem:[%s1713_s27 + $0x198] sm:$0xff] %v1475_v0 }
  0x88   : > { %312 = vst [vmem:[%s1713_s27 + $0x1a0] sm:$0xff] %v1475_v0  ;;  %313 = vst [vmem:[%s1713_s27 + $0x1a8] sm:$0xff] %v1475_v0 }
  0x89   : > { %314 = vst [vmem:[%s1713_s27 + $0x1b0] sm:$0xff] %v1475_v0  ;;  %315 = vst [vmem:[%s1713_s27 + $0x1b8] sm:$0xff] %v1475_v0 }
  0x8a   : > { %316 = vst [vmem:[%s1713_s27 + $0x1c0] sm:$0xff] %v1475_v0  ;;  %317 = vst [vmem:[%s1713_s27 + $0x1c8] sm:$0xff] %v1475_v0 }
  0x8b   : > { %318 = vst [vmem:[%s1713_s27 + $0x1d0] sm:$0xff] %v1475_v0  ;;  %319 = vst [vmem:[%s1713_s27 + $0x1d8] sm:$0xff] %v1475_v0 }
  0x8c   : > { %320 = vst [vmem:[%s1713_s27 + $0x1e0] sm:$0xff] %v1475_v0  ;;  %321 = vst [vmem:[%s1713_s27 + $0x1e8] sm:$0xff] %v1475_v0 }
  0x8d   : > { %322 = vst [vmem:[%s1713_s27 + $0x1f0] sm:$0xff] %v1475_v0  ;;  %323 = vst [vmem:[%s1713_s27 + $0x1f8] sm:$0xff] %v1475_v0 }
  0x8e PF: > { %v389_v1 = vld [vmem:[%s1704_s29 + $0x8] sm:$0xff]  ;;  %v391_v2 = vld [vmem:[%s1704_s29 + $0x18] sm:$0xff]  ;;  %v388_v3 = vld [vmem:[%s1704_s29] sm:$0xff]  ;;  %s1072_s15 = sshll.u32 %s1456_s16, 13  ;;  %s920_s28 = sshll.u32 %s1713_s27, 4  ;;  %s2103_s28 = int_to_ptr.vmem [resolvable:$true] %s920_s28 }
  0x8f   : > { %v1073_v4 = vpack.c.bf16 %v391_v2, %v389_v1  ;;  %v390_v5 = vld [vmem:[%s1704_s29 + $0x10] sm:$0xff]  ;;  %v393_v6 = vld [vmem:[%s1704_s29 + $0x28] sm:$0xff]  ;;  %v395_v7 = vld [vmem:[%s1704_s29 + $0x38] sm:$0xff]  ;;  %s2101_s26 = scalar_lea.hbm %s2174_s2, %s1072_s15  ;;  %s2111_s22 = scalar_lea.sflag [#allocation4], %s247_s14 }
  0x90   : > { %v1075_v8 = vpack.c.bf16 %v390_v5, %v388_v3  ;;  %v1077_v9 = vpack.c.bf16 %v395_v7, %v393_v6  ;;  %v392_v10 = vld [vmem:[%s1704_s29 + $0x20] sm:$0xff]  ;;  %v394_v11 = vld [vmem:[%s1704_s29 + $0x30] sm:$0xff]  ;;  %v397_v12 = vld [vmem:[%s1704_s29 + $0x48] sm:$0xff]  ;;  %s1342_s20 = scalar_lea.vmem %s2103_s28, 8192  ;;  %p2201_p5 = scmp.ne.s32.totalorder %s2190_s3, 0 }
  0x91   : > { %1074 = vmatprep.subr.bf16.mxu0 %v1073_v4  ;;  %1137 = vmatprep.subr.bf16.mxu1 %v1073_v4  ;;  %v399_v13 = vld [vmem:[%s1704_s29 + $0x58] sm:$0xff]  ;;  %v1079_v14 = vpack.c.bf16 %v394_v11, %v392_v10  ;;  %v396_v16 = vld [vmem:[%s1704_s29 + $0x40] sm:$0xff]  ;;  %v398_v17 = vld [vmem:[%s1704_s29 + $0x50] sm:$0xff]  ;;  %p1343_p3 = scmp.ne.s32.totalorder %s2103_s28, %s1342_s20  ;;  %s1476_s11 = smov [#allocation7]  }
  0x92   : > { %1076 = vmatpush1.bf16.msra.mxu0 %v1075_v8  ;;  %1153 = vmatpush1.bf16.msra.mxu1 %v1075_v8  ;;  %v1081_v15 = vpack.c.bf16 %v399_v13, %v397_v12  ;;  %v401_v18 = vld [vmem:[%s1704_s29 + $0x68] sm:$0xff]  ;;  %v403_v19 = vld [vmem:[%s1704_s29 + $0x78] sm:$0xff]  ;;  %v1083_v20 = vpack.c.bf16 %v398_v17, %v396_v16  ;;  %v400_v22 = vld [vmem:[%s1704_s29 + $0x60] sm:$0xff]  ;;  %s1346_s4 = sshll.u32 %s1476_s11, 4  ;;  %s1347_s4 = int_to_ptr.vmem [resolvable:$false] %s1346_s4 }
  0x93   : > { %1078 = vmatprep.subr.bf16.mxu0 %v1077_v9  ;;  %1138 = vmatprep.subr.bf16.mxu1 %v1077_v9  ;;  %v1085_v21 = vpack.c.bf16 %v403_v19, %v401_v18  ;;  %v402_v23 = vld [vmem:[%s1704_s29 + $0x70] sm:$0xff]  ;;  %v405_v24 = vld [vmem:[%s1704_s29 + $0x88] sm:$0xff]  ;;  %v407_v25 = vld [vmem:[%s1704_s29 + $0x98] sm:$0xff]  ;;  %p1344_p1 = pnand %p1343_p3, %p2201_p5  ;;  %s1348_s12 = scalar_lea.vmem %s1347_s4, 16384 }
  0x94   : > { %v1087_v26 = vpack.c.bf16 %v402_v23, %v400_v22  ;;  %v1089_v27 = vpack.c.bf16 %v407_v25, %v405_v24  ;;  %v404_v28 = vld [vmem:[%s1704_s29 + $0x80] sm:$0xff]  ;;  %v406_v29 = vld [vmem:[%s1704_s29 + $0x90] sm:$0xff]  ;;  %v409_v30 = vld [vmem:[%s1704_s29 + $0xa8] sm:$0xff]  ;;  %p1349_p13 = scmp.lt.s32.totalorder %s2103_s28, %s1347_s4  ;;  %p1350_p12 = scmp.lt.s32.totalorder %s1348_s12, %s1342_s20 }
  0x95   : > { %v411_v31 = vld [vmem:[%s1704_s29 + $0xb8] sm:$0xff]  ;;  %v1091_v32 = vpack.c.bf16 %v406_v29, %v404_v28  ;;  %v408_v34 = vld [vmem:[%s1704_s29 + $0xa0] sm:$0xff]  ;;  %v410_v35 = vld [vmem:[%s1704_s29 + $0xb0] sm:$0xff]  ;;  %p1345_p11 = pneg %p1344_p1 }
  0x96   : > { %1080 = vmatpush1.bf16.msra.mxu0 %v1079_v14  ;;  %1154 = vmatpush1.bf16.msra.mxu1 %v1079_v14  ;;  %v1093_v33 = vpack.c.bf16 %v411_v31, %v409_v30  ;;  %v413_v36 = vld [vmem:[%s1704_s29 + $0xc8] sm:$0xff]  ;;  %v415_v37 = vld [vmem:[%s1704_s29 + $0xd8] sm:$0xff]  ;;  %v1095_v38 = vpack.c.bf16 %v410_v35, %v408_v34  ;;  %v412_v39 = vld [vmem:[%s1704_s29 + $0xc0] sm:$0xff]  ;;  %p1351_p2 = por %p1350_p12, %p1349_p13 }
  0x97   : > { %1082 = vmatprep.subr.bf16.mxu0 %v1081_v15  ;;  %1139 = vmatprep.subr.bf16.mxu1 %v1081_v15  ;;  %v1097_v40 = vpack.c.bf16 %v415_v37, %v413_v36  ;;  %v414_v41 = vld [vmem:[%s1704_s29 + $0xd0] sm:$0xff]  ;;  %v325_v42 = vld [vmem:[%s1698_s5 + $0x8] sm:$0xff]  ;;  %v419_v45 = vld [vmem:[%s1704_s29 + $0xf8] sm:$0xff] }
  0x98   : > { %v357_v43 = vld [vmem:[%s1698_s5 + $0x108] sm:$0xff]  ;;  %580 = vmatprep.mubr.f32.mxu0 %v325_v42  ;;  %v1099_v46 = vpack.c.bf16 %v414_v41, %v412_v39  ;;  %v416_v48 = vld [vmem:[%s1704_s29 + $0xe0] sm:$0xff]  ;;  %v418_v49 = vld [vmem:[%s1704_s29 + $0xf0] sm:$0xff]  ;;  %p1352_p9 = pnand %p1351_p2, %p1345_p11 }
  0x99   : > { %v417_v44 = vld [vmem:[%s1704_s29 + $0xe8] sm:$0xff]  ;;  %676 = vmatprep.mubr.f32.mxu1 %v357_v43  ;;  %v423_v51 = vld [vmem:[%s1704_s29 + $0x118] sm:$0xff]  ;;  %v1103_v52 = vpack.c.bf16 %v418_v49, %v416_v48  ;;  %v420_v54 = vld [vmem:[%s1704_s29 + $0x100] sm:$0xff] }
  0x9a   : > { %1084 = vmatpush1.bf16.msra.mxu0 %v1083_v20  ;;  %1155 = vmatpush1.bf16.msra.mxu1 %v1083_v20  ;;  %v1101_v47 = vpack.c.bf16 %v419_v45, %v417_v44  ;;  %v421_v50 = vld [vmem:[%s1704_s29 + $0x108] sm:$0xff]  ;;  %v422_v55 = vld [vmem:[%s1704_s29 + $0x110] sm:$0xff]  ;;  %v427_v57 = vld [vmem:[%s1704_s29 + $0x138] sm:$0xff] }
  0x9b   : > { %1086 = vmatprep.subr.bf16.mxu0 %v1085_v21  ;;  %1140 = vmatprep.subr.bf16.mxu1 %v1085_v21  ;;  %v1105_v53 = vpack.c.bf16 %v423_v51, %v421_v50  ;;  %v425_v56 = vld [vmem:[%s1704_s29 + $0x128] sm:$0xff]  ;;  %v1107_v58 = vpack.c.bf16 %v422_v55, %v420_v54  ;;  %v424_v60 = vld [vmem:[%s1704_s29 + $0x120] sm:$0xff]  ;;  %v426_v61 = vld [vmem:[%s1704_s29 + $0x130] sm:$0xff] }
  0x9c   : > { %v1109_v59 = vpack.c.bf16 %v427_v57, %v425_v56  ;;  %v429_v62 = vld [vmem:[%s1704_s29 + $0x148] sm:$0xff]  ;;  %v431_v63 = vld [vmem:[%s1704_s29 + $0x158] sm:$0xff]  ;;  %v1111_v0 = vpack.c.bf16 %v426_v61, %v424_v60  ;;  %v428_v2 = vld [vmem:[%s1704_s29 + $0x140] sm:$0xff] }
  0x9d   : > { %v1113_v1 = vpack.c.bf16 %v431_v63, %v429_v62  ;;  %v430_v3 = vld [vmem:[%s1704_s29 + $0x150] sm:$0xff]  ;;  %v433_v4 = vld [vmem:[%s1704_s29 + $0x168] sm:$0xff]  ;;  %v435_v5 = vld [vmem:[%s1704_s29 + $0x178] sm:$0xff] }
  0x9e   : > { %1088 = vmatpush1.bf16.msra.mxu0 %v1087_v26  ;;  %1156 = vmatpush1.bf16.msra.mxu1 %v1087_v26  ;;  %v1115_v6 = vpack.c.bf16 %v430_v3, %v428_v2  ;;  %v1117_v7 = vpack.c.bf16 %v435_v5, %v433_v4  ;;  %v432_v8 = vld [vmem:[%s1704_s29 + $0x160] sm:$0xff]  ;;  %v434_v9 = vld [vmem:[%s1704_s29 + $0x170] sm:$0xff]  ;;  %v437_v10 = vld [vmem:[%s1704_s29 + $0x188] sm:$0xff] }
  0x9f   : > { %1090 = vmatprep.subr.bf16.mxu0 %v1089_v27  ;;  %1141 = vmatprep.subr.bf16.mxu1 %v1089_v27  ;;  %v439_v11 = vld [vmem:[%s1704_s29 + $0x198] sm:$0xff]  ;;  %v1119_v12 = vpack.c.bf16 %v434_v9, %v432_v8  ;;  %v436_v14 = vld [vmem:[%s1704_s29 + $0x180] sm:$0xff]  ;;  %v438_v15 = vld [vmem:[%s1704_s29 + $0x190] sm:$0xff] }
  0xa0   : > { %v1121_v13 = vpack.c.bf16 %v439_v11, %v437_v10  ;;  %v441_v16 = vld [vmem:[%s1704_s29 + $0x1a8] sm:$0xff]  ;;  %v443_v17 = vld [vmem:[%s1704_s29 + $0x1b8] sm:$0xff]  ;;  %v1123_v18 = vpack.c.bf16 %v438_v15, %v436_v14  ;;  %v440_v20 = vld [vmem:[%s1704_s29 + $0x1a0] sm:$0xff] }
  0xa1   : > { %v1125_v19 = vpack.c.bf16 %v443_v17, %v441_v16  ;;  %v442_v21 = vld [vmem:[%s1704_s29 + $0x1b0] sm:$0xff]  ;;  %v445_v22 = vld [vmem:[%s1704_s29 + $0x1c8] sm:$0xff]  ;;  %v447_v23 = vld [vmem:[%s1704_s29 + $0x1d8] sm:$0xff] }
  0xa2   : > { %1092 = vmatpush1.bf16.msra.mxu0 %v1091_v32  ;;  %1157 = vmatpush1.bf16.msra.mxu1 %v1091_v32  ;;  %v1127_v24 = vpack.c.bf16 %v442_v21, %v440_v20  ;;  %v1129_v25 = vpack.c.bf16 %v447_v23, %v445_v22  ;;  %v444_v26 = vld [vmem:[%s1704_s29 + $0x1c0] sm:$0xff]  ;;  %v446_v27 = vld [vmem:[%s1704_s29 + $0x1d0] sm:$0xff]  ;;  %v449_v28 = vld [vmem:[%s1704_s29 + $0x1e8] sm:$0xff] }
  0xa3   : > { %1094 = vmatprep.subr.bf16.mxu0 %v1093_v33  ;;  %1142 = vmatprep.subr.bf16.mxu1 %v1093_v33  ;;  %v451_v29 = vld [vmem:[%s1704_s29 + $0x1f8] sm:$0xff]  ;;  %v1131_v30 = vpack.c.bf16 %v446_v27, %v444_v26  ;;  %v448_v32 = vld [vmem:[%s1704_s29 + $0x1e0] sm:$0xff]  ;;  %v450_v33 = vld [vmem:[%s1704_s29 + $0x1f0] sm:$0xff] }
  0xa4   : > { %v1133_v31 = vpack.c.bf16 %v451_v29, %v449_v28  ;;  %v1135_v34 = vpack.c.bf16 %v450_v33, %v448_v32  ;;  %v324_v35 = vld [vmem:[%s1698_s5] sm:$0xff]  ;;  %v327_v37 = vld [vmem:[%s1698_s5 + $0x18] sm:$0xff]  ;;  %v326_v39 = vld [vmem:[%s1698_s5 + $0x10] sm:$0xff] }
  0xa5   : > { %v356_v36 = vld [vmem:[%s1698_s5 + $0x100] sm:$0xff]  ;;  %v329_v41 = vld [vmem:[%s1698_s5 + $0x28] sm:$0xff]  ;;  %v331_v45 = vld [vmem:[%s1698_s5 + $0x38] sm:$0xff] }
  0xa6   : > { %1096 = vmatpush1.bf16.msra.mxu0 %v1095_v38  ;;  %1158 = vmatpush1.bf16.msra.mxu1 %v1095_v38  ;;  %v359_v38 = vld [vmem:[%s1698_s5 + $0x118] sm:$0xff]  ;;  %v361_v42 = vld [vmem:[%s1698_s5 + $0x128] sm:$0xff]  ;;  %v328_v43 = vld [vmem:[%s1698_s5 + $0x20] sm:$0xff] }
  0xa7   : > { %1098 = vmatprep.subr.bf16.mxu0 %v1097_v40  ;;  %1143 = vmatprep.subr.bf16.mxu1 %v1097_v40  ;;  %v358_v40 = vld [vmem:[%s1698_s5 + $0x110] sm:$0xff]  ;;  %v360_v44 = vld [vmem:[%s1698_s5 + $0x120] sm:$0xff]  ;;  %v333_v49 = vld [vmem:[%s1698_s5 + $0x48] sm:$0xff] }
  0xa8   : > { %v362_v48 = vld [vmem:[%s1698_s5 + $0x130] sm:$0xff]  ;;  %v365_v50 = vld [vmem:[%s1698_s5 + $0x148] sm:$0xff]  ;;  %v332_v51 = vld [vmem:[%s1698_s5 + $0x40] sm:$0xff] }
  0xa9   : > { %v367_v54 = vld [vmem:[%s1698_s5 + $0x158] sm:$0xff]  ;;  %v334_v55 = vld [vmem:[%s1698_s5 + $0x50] sm:$0xff]  ;;  %v337_v57 = vld [vmem:[%s1698_s5 + $0x68] sm:$0xff] }
  0xaa   : > { %1100 = vmatpush1.bf16.msra.mxu0 %v1099_v46  ;;  %1159 = vmatpush1.bf16.msra.mxu1 %v1099_v46  ;;  %v363_v46 = vld [vmem:[%s1698_s5 + $0x138] sm:$0xff]  ;;  %v366_v56 = vld [vmem:[%s1698_s5 + $0x150] sm:$0xff]  ;;  %v368_v60 = vld [vmem:[%s1698_s5 + $0x160] sm:$0xff] }
  0xab   : > { %1102 = vmatprep.subr.bf16.mxu0 %v1101_v47  ;;  %1144 = vmatprep.subr.bf16.mxu1 %v1101_v47  ;;  %v330_v47 = vld [vmem:[%s1698_s5 + $0x30] sm:$0xff]  ;;  %v339_v61 = vld [vmem:[%s1698_s5 + $0x78] sm:$0xff]  ;;  %v373_v2 = vld [vmem:[%s1698_s5 + $0x188] sm:$0xff] }
  0xac   : > { %v371_v62 = vld [vmem:[%s1698_s5 + $0x178] sm:$0xff]  ;;  %v338_v63 = vld [vmem:[%s1698_s5 + $0x70] sm:$0xff]  ;;  %v340_v3 = vld [vmem:[%s1698_s5 + $0x80] sm:$0xff] }
  0xad   : > { %v372_v4 = vld [vmem:[%s1698_s5 + $0x180] sm:$0xff]  ;;  %v343_v5 = vld [vmem:[%s1698_s5 + $0x98] sm:$0xff]  ;;  %v374_v8 = vld [vmem:[%s1698_s5 + $0x190] sm:$0xff] }
  0xae   : > { %1104 = vmatpush1.bf16.msra.mxu0 %v1103_v52  ;;  %1160 = vmatpush1.bf16.msra.mxu1 %v1103_v52  ;;  %v364_v52 = vld [vmem:[%s1698_s5 + $0x140] sm:$0xff]  ;;  %v345_v9 = vld [vmem:[%s1698_s5 + $0xa8] sm:$0xff]  ;;  %v379_v14 = vld [vmem:[%s1698_s5 + $0x1b8] sm:$0xff] }
  0xaf   : > { %1106 = vmatprep.subr.bf16.mxu0 %v1105_v53  ;;  %1145 = vmatprep.subr.bf16.mxu1 %v1105_v53  ;;  %v335_v53 = vld [vmem:[%s1698_s5 + $0x58] sm:$0xff]  ;;  %v377_v10 = vld [vmem:[%s1698_s5 + $0x1a8] sm:$0xff]  ;;  %v344_v11 = vld [vmem:[%s1698_s5 + $0xa0] sm:$0xff] }
  0xb0   : > { %v346_v15 = vld [vmem:[%s1698_s5 + $0xb0] sm:$0xff]  ;;  %v349_v17 = vld [vmem:[%s1698_s5 + $0xc8] sm:$0xff]  ;;  %v380_v20 = vld [vmem:[%s1698_s5 + $0x1c0] sm:$0xff] }
  0xb1   : > { %v378_v16 = vld [vmem:[%s1698_s5 + $0x1b0] sm:$0xff]  ;;  %v351_v21 = vld [vmem:[%s1698_s5 + $0xd8] sm:$0xff]  ;;  %v385_v26 = vld [vmem:[%s1698_s5 + $0x1e8] sm:$0xff] }
  0xb2   : > { %1108 = vmatpush1.bf16.msra.mxu0 %v1107_v58  ;;  %1161 = vmatpush1.bf16.msra.mxu1 %v1107_v58  ;;  %v369_v58 = vld [vmem:[%s1698_s5 + $0x168] sm:$0xff]  ;;  %v383_v22 = vld [vmem:[%s1698_s5 + $0x1d8] sm:$0xff]  ;;  %v350_v23 = vld [vmem:[%s1698_s5 + $0xd0] sm:$0xff] }
  0xb3   : > { %1110 = vmatprep.subr.bf16.mxu0 %v1109_v59  ;;  %1146 = vmatprep.subr.bf16.mxu1 %v1109_v59  ;;  %v336_v59 = vld [vmem:[%s1698_s5 + $0x60] sm:$0xff]  ;;  %v355_v29 = vld [vmem:[%s1698_s5 + $0xf8] sm:$0xff]  ;;  %v386_v32 = vld [vmem:[%s1698_s5 + $0x1f0] sm:$0xff] }
  0xb4   : > { %v352_v27 = vld [vmem:[%s1698_s5 + $0xe0] sm:$0xff] }
  0xb5   : > { %v384_v28 = vld [vmem:[%s1698_s5 + $0x1e0] sm:$0xff] }
  0xb6   : > { %1112 = vmatpush1.bf16.msra.mxu0 %v1111_v0  ;;  %1162 = vmatpush1.bf16.msra.mxu1 %v1111_v0  ;;  %v370_v0 = vld [vmem:[%s1698_s5 + $0x170] sm:$0xff]  ;;  %v452_v33 = vld [vmem:[%s1713_s27] sm:$0xff] }
  0xb7   : > { %1114 = vmatprep.subr.bf16.mxu0 %v1113_v1  ;;  %1147 = vmatprep.subr.bf16.mxu1 %v1113_v1  ;;  %v341_v1 = vld [vmem:[%s1698_s5 + $0x88] sm:$0xff] }
  0xba   : > { %1116 = vmatpush1.bf16.msra.mxu0 %v1115_v6  ;;  %1163 = vmatpush1.bf16.msra.mxu1 %v1115_v6  ;;  %v375_v6 = vld [vmem:[%s1698_s5 + $0x198] sm:$0xff] }
  0xbb   : > { %1118 = vmatprep.subr.bf16.mxu0 %v1117_v7  ;;  %1148 = vmatprep.subr.bf16.mxu1 %v1117_v7  ;;  %v342_v7 = vld [vmem:[%s1698_s5 + $0x90] sm:$0xff] }
  0xbe   : > { %1120 = vmatpush1.bf16.msra.mxu0 %v1119_v12  ;;  %1164 = vmatpush1.bf16.msra.mxu1 %v1119_v12  ;;  %v376_v12 = vld [vmem:[%s1698_s5 + $0x1a0] sm:$0xff] }
  0xbf   : > { %1122 = vmatprep.subr.bf16.mxu0 %v1121_v13  ;;  %1149 = vmatprep.subr.bf16.mxu1 %v1121_v13  ;;  %v347_v13 = vld [vmem:[%s1698_s5 + $0xb8] sm:$0xff] }
  0xc2   : > { %1124 = vmatpush1.bf16.msra.mxu0 %v1123_v18  ;;  %1165 = vmatpush1.bf16.msra.mxu1 %v1123_v18  ;;  %v381_v18 = vld [vmem:[%s1698_s5 + $0x1c8] sm:$0xff] }
  0xc3   : > { %1126 = vmatprep.subr.bf16.mxu0 %v1125_v19  ;;  %1150 = vmatprep.subr.bf16.mxu1 %v1125_v19  ;;  %v348_v19 = vld [vmem:[%s1698_s5 + $0xc0] sm:$0xff] }
  0xc6   : > { %1128 = vmatpush1.bf16.msra.mxu0 %v1127_v24  ;;  %1166 = vmatpush1.bf16.msra.mxu1 %v1127_v24  ;;  %v382_v24 = vld [vmem:[%s1698_s5 + $0x1d0] sm:$0xff] }
  0xc7   : > { %1130 = vmatprep.subr.bf16.mxu0 %v1129_v25  ;;  %1151 = vmatprep.subr.bf16.mxu1 %v1129_v25  ;;  %v353_v25 = vld [vmem:[%s1698_s5 + $0xe8] sm:$0xff] }
  0xca   : > { %1132 = vmatpush1.bf16.msra.mxu0 %v1131_v30  ;;  %1167 = vmatpush1.bf16.msra.mxu1 %v1131_v30  ;;  %v387_v30 = vld [vmem:[%s1698_s5 + $0x1f8] sm:$0xff] }
  0xcb   : > { %1134 = vmatprep.subr.bf16.mxu0 %v1133_v31  ;;  %1152 = vmatprep.subr.bf16.mxu1 %v1133_v31  ;;  %v354_v31 = vld [vmem:[%s1698_s5 + $0xf0] sm:$0xff] }
  0xce   : > { %1136 = vmatpush1.bf16.msra.mxu0 %v1135_v34  ;;  %1168 = vmatpush1.bf16.msra.mxu1 %v1135_v34  ;;  %v484_v34 = vld [vmem:[%s1713_s27 + $0x100] sm:$0xff] }
  0xd1   : > { %581 = vmatmul.mubr.f32.vlgmr.msra.gmra.mrb[0].mxu0 %v324_v35  ;;  %677 = vmatmul.mubr.f32.vlgmr.msra.gmra.mrb[0].mxu1 %v356_v36  ;;  %v453_v35 = vld [vmem:[%s1713_s27 + $0x8] sm:$0xff] }
  0xd2   : > { %586 = vmatprep.mubr.f32.mxu0 %v327_v37  ;;  %682 = vmatprep.mubr.f32.mxu1 %v359_v38  ;;  %v485_v36 = vld [vmem:[%s1713_s27 + $0x108] sm:$0xff] }
  0xd5   : > { %587 = vmatmul.mubr.f32.gmra.mrb[2].mxu0 %v326_v39  ;;  %683 = vmatmul.mubr.f32.gmra.mrb[2].mxu1 %v358_v40 }
  0xd6   : > { %592 = vmatprep.mubr.f32.mxu0 %v329_v41  ;;  %688 = vmatprep.mubr.f32.mxu1 %v361_v42 }
  0xd9   : > { %593 = vmatmul.mubr.f32.gmra.mrb[4].mxu0 %v328_v43  ;;  %689 = vmatmul.mubr.f32.gmra.mrb[4].mxu1 %v360_v44 }
  0xda   : > { %598 = vmatprep.mubr.f32.mxu0 %v331_v45  ;;  %694 = vmatprep.mubr.f32.mxu1 %v363_v46  ;;  %v454_v45 = vld [vmem:[%s1713_s27 + $0x10] sm:$0xff] }
  0xdb   : > { %v486_v46 = vld [vmem:[%s1713_s27 + $0x110] sm:$0xff] }
  0xdd   : > { %599 = vmatmul.mubr.f32.gmra.mrb[6].mxu0 %v330_v47  ;;  %695 = vmatmul.mubr.f32.gmra.mrb[6].mxu1 %v362_v48  ;;  %v455_v47 = vld [vmem:[%s1713_s27 + $0x18] sm:$0xff] }
  0xde   : > { %604 = vmatprep.mubr.f32.mxu0 %v333_v49  ;;  %700 = vmatprep.mubr.f32.mxu1 %v365_v50  ;;  %v487_v48 = vld [vmem:[%s1713_s27 + $0x118] sm:$0xff] }
  0xe1   : > { %605 = vmatmul.mubr.f32.gmra.mrb[8].mxu0 %v332_v51  ;;  %701 = vmatmul.mubr.f32.gmra.mrb[8].mxu1 %v364_v52 }
  0xe2   : > { %610 = vmatprep.mubr.f32.mxu0 %v335_v53  ;;  %706 = vmatprep.mubr.f32.mxu1 %v367_v54 }
  0xe5   : > { %611 = vmatmul.mubr.f32.gmra.mrb[10].mxu0 %v334_v55  ;;  %707 = vmatmul.mubr.f32.gmra.mrb[10].mxu1 %v366_v56 }
  0xe6   : > { %616 = vmatprep.mubr.f32.mxu0 %v337_v57  ;;  %712 = vmatprep.mubr.f32.mxu1 %v369_v58  ;;  %v456_v57 = vld [vmem:[%s1713_s27 + $0x20] sm:$0xff] }
  0xe7   : > { %v488_v58 = vld [vmem:[%s1713_s27 + $0x120] sm:$0xff] }
  0xe9   : > { %617 = vmatmul.mubr.f32.gmra.mrb[12].mxu0 %v336_v59  ;;  %713 = vmatmul.mubr.f32.gmra.mrb[12].mxu1 %v368_v60  ;;  %v457_v59 = vld [vmem:[%s1713_s27 + $0x28] sm:$0xff] }
  0xea   : > { %622 = vmatprep.mubr.f32.mxu0 %v339_v61  ;;  %718 = vmatprep.mubr.f32.mxu1 %v371_v62  ;;  %v489_v60 = vld [vmem:[%s1713_s27 + $0x128] sm:$0xff] }
  0xed   : > { %623 = vmatmul.mubr.f32.gmra.mrb[14].mxu0 %v338_v63  ;;  %719 = vmatmul.mubr.f32.gmra.mrb[14].mxu1 %v370_v0 }
  0xee   : > { %628 = vmatprep.mubr.f32.mxu0 %v341_v1  ;;  %724 = vmatprep.mubr.f32.mxu1 %v373_v2 }
  0xf1   : > { %629 = vmatmul.mubr.f32.gmra.mrb[16].mxu0 %v340_v3  ;;  %725 = vmatmul.mubr.f32.gmra.mrb[16].mxu1 %v372_v4 }
  0xf2   : > { %634 = vmatprep.mubr.f32.mxu0 %v343_v5  ;;  %730 = vmatprep.mubr.f32.mxu1 %v375_v6  ;;  %v458_v5 = vld [vmem:[%s1713_s27 + $0x30] sm:$0xff] }
  0xf3   : > { %v490_v6 = vld [vmem:[%s1713_s27 + $0x130] sm:$0xff] }
  0xf5   : > { %635 = vmatmul.mubr.f32.gmra.mrb[18].mxu0 %v342_v7  ;;  %731 = vmatmul.mubr.f32.gmra.mrb[18].mxu1 %v374_v8  ;;  %v459_v7 = vld [vmem:[%s1713_s27 + $0x38] sm:$0xff] }
  0xf6   : > { %640 = vmatprep.mubr.f32.mxu0 %v345_v9  ;;  %736 = vmatprep.mubr.f32.mxu1 %v377_v10  ;;  %v491_v8 = vld [vmem:[%s1713_s27 + $0x138] sm:$0xff] }
  0xf9   : > { %641 = vmatmul.mubr.f32.gmra.mrb[20].mxu0 %v344_v11  ;;  %737 = vmatmul.mubr.f32.gmra.mrb[20].mxu1 %v376_v12 }
  0xfa   : > { %646 = vmatprep.mubr.f32.mxu0 %v347_v13  ;;  %742 = vmatprep.mubr.f32.mxu1 %v379_v14 }
  0xfd   : > { %647 = vmatmul.mubr.f32.gmra.mrb[22].mxu0 %v346_v15  ;;  %743 = vmatmul.mubr.f32.gmra.mrb[22].mxu1 %v378_v16 }
  0xfe   : > { %652 = vmatprep.mubr.f32.mxu0 %v349_v17  ;;  %748 = vmatprep.mubr.f32.mxu1 %v381_v18  ;;  %v460_v17 = vld [vmem:[%s1713_s27 + $0x40] sm:$0xff] }
  0xff   : > { %v492_v18 = vld [vmem:[%s1713_s27 + $0x140] sm:$0xff] }
 0x101   : > { %653 = vmatmul.mubr.f32.gmra.mrb[24].mxu0 %v348_v19  ;;  %749 = vmatmul.mubr.f32.gmra.mrb[24].mxu1 %v380_v20  ;;  %v461_v19 = vld [vmem:[%s1713_s27 + $0x48] sm:$0xff] }
 0x102   : > { %658 = vmatprep.mubr.f32.mxu0 %v351_v21  ;;  %754 = vmatprep.mubr.f32.mxu1 %v383_v22  ;;  %v493_v20 = vld [vmem:[%s1713_s27 + $0x148] sm:$0xff] }
 0x105   : > { %659 = vmatmul.mubr.f32.gmra.mrb[26].mxu0 %v350_v23  ;;  %755 = vmatmul.mubr.f32.gmra.mrb[26].mxu1 %v382_v24 }
 0x106   : > { %664 = vmatprep.mubr.f32.mxu0 %v353_v25  ;;  %760 = vmatprep.mubr.f32.mxu1 %v385_v26 }
 0x109   : > { %665 = vmatmul.mubr.f32.gmra.mrb[28].mxu0 %v352_v27  ;;  %761 = vmatmul.mubr.f32.gmra.mrb[28].mxu1 %v384_v28 }
 0x10a   : > { %670 = vmatprep.mubr.f32.mxu0 %v355_v29  ;;  %766 = vmatprep.mubr.f32.mxu1 %v387_v30  ;;  %v462_v29 = vld [vmem:[%s1713_s27 + $0x50] sm:$0xff] }
 0x10b   : > { %v494_v30 = vld [vmem:[%s1713_s27 + $0x150] sm:$0xff] }
 0x10d   : > { %671 = vmatmul.mubr.f32.gmra.mrb[30].mxu0 %v354_v31  ;;  %767 = vmatmul.mubr.f32.gmra.mrb[30].mxu1 %v386_v32  ;;  %v463_v31 = vld [vmem:[%s1713_s27 + $0x58] sm:$0xff] }
 0x10e   : > { %v495_v32 = vld [vmem:[%s1713_s27 + $0x158] sm:$0xff] }
 0x1a4   : > { %v582_v37 = vpop.f32.mrb[0].mxu0  ;;  %v678_v38 = vpop.f32.mrb[0].mxu1 }
 0x1a5   : > { %v773_v39 = vadd.f32 %v582_v37, %v452_v33  ;;  %v805_v40 = vadd.f32 %v678_v38, %v484_v34  ;;  %v584_v41 = vpop.f32.mrb[1].mxu0  ;;  %v680_v42 = vpop.f32.mrb[1].mxu1 }
 0x1a6   : > { %v774_v43 = vadd.f32 %v584_v41, %v453_v35  ;;  %v806_v44 = vadd.f32 %v680_v42, %v485_v36  ;;  %v464_v41 = vld [vmem:[%s1713_s27 + $0x60] sm:$0xff] }
 0x1a7   : > { %837 = vst [vmem:[%s1713_s27] sm:$0xff] %v773_v39  ;;  %869 = vst [vmem:[%s1713_s27 + $0x100] sm:$0xff] %v805_v40  ;;  %v496_v42 = vld [vmem:[%s1713_s27 + $0x160] sm:$0xff] }
 0x1a8   : > { %838 = vst [vmem:[%s1713_s27 + $0x8] sm:$0xff] %v774_v43  ;;  %870 = vst [vmem:[%s1713_s27 + $0x108] sm:$0xff] %v806_v44  ;;  %v588_v49 = vpop.f32.mrb[2].mxu0  ;;  %v684_v50 = vpop.f32.mrb[2].mxu1  ;;  %v465_v43 = vld [vmem:[%s1713_s27 + $0x68] sm:$0xff] }
 0x1a9   : > { %v775_v51 = vadd.f32 %v588_v49, %v454_v45  ;;  %v807_v52 = vadd.f32 %v684_v50, %v486_v46  ;;  %v590_v53 = vpop.f32.mrb[3].mxu0  ;;  %v686_v54 = vpop.f32.mrb[3].mxu1  ;;  %v497_v44 = vld [vmem:[%s1713_s27 + $0x168] sm:$0xff] }
 0x1aa   : > { %v776_v55 = vadd.f32 %v590_v53, %v455_v47  ;;  %v808_v56 = vadd.f32 %v686_v54, %v487_v48  ;;  %v466_v53 = vld [vmem:[%s1713_s27 + $0x70] sm:$0xff] }
 0x1ab   : > { %839 = vst [vmem:[%s1713_s27 + $0x10] sm:$0xff] %v775_v51  ;;  %871 = vst [vmem:[%s1713_s27 + $0x110] sm:$0xff] %v807_v52  ;;  %v498_v54 = vld [vmem:[%s1713_s27 + $0x170] sm:$0xff] }
 0x1ac   : > { %840 = vst [vmem:[%s1713_s27 + $0x18] sm:$0xff] %v776_v55  ;;  %872 = vst [vmem:[%s1713_s27 + $0x118] sm:$0xff] %v808_v56  ;;  %v594_v61 = vpop.f32.mrb[4].mxu0  ;;  %v690_v62 = vpop.f32.mrb[4].mxu1  ;;  %v467_v55 = vld [vmem:[%s1713_s27 + $0x78] sm:$0xff] }
 0x1ad   : > { %v777_v63 = vadd.f32 %v594_v61, %v456_v57  ;;  %v809_v0 = vadd.f32 %v690_v62, %v488_v58  ;;  %v596_v1 = vpop.f32.mrb[5].mxu0  ;;  %v692_v2 = vpop.f32.mrb[5].mxu1  ;;  %v499_v56 = vld [vmem:[%s1713_s27 + $0x178] sm:$0xff] }
 0x1ae   : > { %v778_v3 = vadd.f32 %v596_v1, %v457_v59  ;;  %v810_v4 = vadd.f32 %v692_v2, %v489_v60  ;;  %v468_v1 = vld [vmem:[%s1713_s27 + $0x80] sm:$0xff] }
 0x1af   : > { %841 = vst [vmem:[%s1713_s27 + $0x20] sm:$0xff] %v777_v63  ;;  %873 = vst [vmem:[%s1713_s27 + $0x120] sm:$0xff] %v809_v0  ;;  %v500_v2 = vld [vmem:[%s1713_s27 + $0x180] sm:$0xff] }
 0x1b0   : > { %842 = vst [vmem:[%s1713_s27 + $0x28] sm:$0xff] %v778_v3  ;;  %874 = vst [vmem:[%s1713_s27 + $0x128] sm:$0xff] %v810_v4  ;;  %v600_v9 = vpop.f32.mrb[6].mxu0  ;;  %v696_v10 = vpop.f32.mrb[6].mxu1  ;;  %v469_v3 = vld [vmem:[%s1713_s27 + $0x88] sm:$0xff] }
 0x1b1   : > { %v779_v11 = vadd.f32 %v600_v9, %v458_v5  ;;  %v811_v12 = vadd.f32 %v696_v10, %v490_v6  ;;  %v602_v13 = vpop.f32.mrb[7].mxu0  ;;  %v698_v14 = vpop.f32.mrb[7].mxu1  ;;  %v501_v4 = vld [vmem:[%s1713_s27 + $0x188] sm:$0xff] }
 0x1b2   : > { %v780_v15 = vadd.f32 %v602_v13, %v459_v7  ;;  %v812_v16 = vadd.f32 %v698_v14, %v491_v8  ;;  %v470_v13 = vld [vmem:[%s1713_s27 + $0x90] sm:$0xff] }
 0x1b3   : > { %843 = vst [vmem:[%s1713_s27 + $0x30] sm:$0xff] %v779_v11  ;;  %875 = vst [vmem:[%s1713_s27 + $0x130] sm:$0xff] %v811_v12  ;;  %v502_v14 = vld [vmem:[%s1713_s27 + $0x190] sm:$0xff] }
 0x1b4   : > { %844 = vst [vmem:[%s1713_s27 + $0x38] sm:$0xff] %v780_v15  ;;  %876 = vst [vmem:[%s1713_s27 + $0x138] sm:$0xff] %v812_v16  ;;  %v606_v21 = vpop.f32.mrb[8].mxu0  ;;  %v702_v22 = vpop.f32.mrb[8].mxu1  ;;  %v471_v15 = vld [vmem:[%s1713_s27 + $0x98] sm:$0xff] }
 0x1b5   : > { %v781_v23 = vadd.f32 %v606_v21, %v460_v17  ;;  %v813_v24 = vadd.f32 %v702_v22, %v492_v18  ;;  %v608_v25 = vpop.f32.mrb[9].mxu0  ;;  %v704_v26 = vpop.f32.mrb[9].mxu1  ;;  %v503_v16 = vld [vmem:[%s1713_s27 + $0x198] sm:$0xff] }
 0x1b6   : > { %v782_v27 = vadd.f32 %v608_v25, %v461_v19  ;;  %v814_v28 = vadd.f32 %v704_v26, %v493_v20  ;;  %v472_v25 = vld [vmem:[%s1713_s27 + $0xa0] sm:$0xff] }
 0x1b7   : > { %845 = vst [vmem:[%s1713_s27 + $0x40] sm:$0xff] %v781_v23  ;;  %877 = vst [vmem:[%s1713_s27 + $0x140] sm:$0xff] %v813_v24  ;;  %v504_v26 = vld [vmem:[%s1713_s27 + $0x1a0] sm:$0xff] }
 0x1b8   : > { %846 = vst [vmem:[%s1713_s27 + $0x48] sm:$0xff] %v782_v27  ;;  %878 = vst [vmem:[%s1713_s27 + $0x148] sm:$0xff] %v814_v28  ;;  %v612_v33 = vpop.f32.mrb[10].mxu0  ;;  %v708_v34 = vpop.f32.mrb[10].mxu1  ;;  %v473_v27 = vld [vmem:[%s1713_s27 + $0xa8] sm:$0xff] }
 0x1b9   : > { %v783_v35 = vadd.f32 %v612_v33, %v462_v29  ;;  %v815_v36 = vadd.f32 %v708_v34, %v494_v30  ;;  %v614_v37 = vpop.f32.mrb[11].mxu0  ;;  %v710_v38 = vpop.f32.mrb[11].mxu1  ;;  %v505_v28 = vld [vmem:[%s1713_s27 + $0x1a8] sm:$0xff] }
 0x1ba   : > { %v784_v39 = vadd.f32 %v614_v37, %v463_v31  ;;  %v816_v40 = vadd.f32 %v710_v38, %v495_v32  ;;  %v474_v37 = vld [vmem:[%s1713_s27 + $0xb0] sm:$0xff] }
 0x1bb   : > { %847 = vst [vmem:[%s1713_s27 + $0x50] sm:$0xff] %v783_v35  ;;  %879 = vst [vmem:[%s1713_s27 + $0x150] sm:$0xff] %v815_v36  ;;  %v506_v38 = vld [vmem:[%s1713_s27 + $0x1b0] sm:$0xff] }
 0x1bc   : > { %848 = vst [vmem:[%s1713_s27 + $0x58] sm:$0xff] %v784_v39  ;;  %880 = vst [vmem:[%s1713_s27 + $0x158] sm:$0xff] %v816_v40  ;;  %v618_v45 = vpop.f32.mrb[12].mxu0  ;;  %v714_v46 = vpop.f32.mrb[12].mxu1  ;;  %v475_v39 = vld [vmem:[%s1713_s27 + $0xb8] sm:$0xff] }
 0x1bd   : > { %v785_v47 = vadd.f32 %v618_v45, %v464_v41  ;;  %v817_v48 = vadd.f32 %v714_v46, %v496_v42  ;;  %v620_v49 = vpop.f32.mrb[13].mxu0  ;;  %v716_v50 = vpop.f32.mrb[13].mxu1  ;;  %v507_v40 = vld [vmem:[%s1713_s27 + $0x1b8] sm:$0xff] }
 0x1be   : > { %v786_v51 = vadd.f32 %v620_v49, %v465_v43  ;;  %v818_v52 = vadd.f32 %v716_v50, %v497_v44  ;;  %v476_v49 = vld [vmem:[%s1713_s27 + $0xc0] sm:$0xff] }
 0x1bf   : > { %849 = vst [vmem:[%s1713_s27 + $0x60] sm:$0xff] %v785_v47  ;;  %881 = vst [vmem:[%s1713_s27 + $0x160] sm:$0xff] %v817_v48  ;;  %v508_v50 = vld [vmem:[%s1713_s27 + $0x1c0] sm:$0xff] }
 0x1c0   : > { %850 = vst [vmem:[%s1713_s27 + $0x68] sm:$0xff] %v786_v51  ;;  %882 = vst [vmem:[%s1713_s27 + $0x168] sm:$0xff] %v818_v52  ;;  %v624_v57 = vpop.f32.mrb[14].mxu0  ;;  %v720_v58 = vpop.f32.mrb[14].mxu1  ;;  %v477_v51 = vld [vmem:[%s1713_s27 + $0xc8] sm:$0xff] }
 0x1c1   : > { %v787_v59 = vadd.f32 %v624_v57, %v466_v53  ;;  %v819_v60 = vadd.f32 %v720_v58, %v498_v54  ;;  %v626_v61 = vpop.f32.mrb[15].mxu0  ;;  %v722_v62 = vpop.f32.mrb[15].mxu1  ;;  %v509_v52 = vld [vmem:[%s1713_s27 + $0x1c8] sm:$0xff] }
 0x1c2   : > { %v788_v63 = vadd.f32 %v626_v61, %v467_v55  ;;  %v820_v0 = vadd.f32 %v722_v62, %v499_v56  ;;  %v478_v61 = vld [vmem:[%s1713_s27 + $0xd0] sm:$0xff] }
 0x1c3   : > { %851 = vst [vmem:[%s1713_s27 + $0x70] sm:$0xff] %v787_v59  ;;  %883 = vst [vmem:[%s1713_s27 + $0x170] sm:$0xff] %v819_v60  ;;  %v510_v62 = vld [vmem:[%s1713_s27 + $0x1d0] sm:$0xff] }
 0x1c4   : > { %852 = vst [vmem:[%s1713_s27 + $0x78] sm:$0xff] %v788_v63  ;;  %884 = vst [vmem:[%s1713_s27 + $0x178] sm:$0xff] %v820_v0  ;;  %v630_v5 = vpop.f32.mrb[16].mxu0  ;;  %v726_v6 = vpop.f32.mrb[16].mxu1  ;;  %v479_v63 = vld [vmem:[%s1713_s27 + $0xd8] sm:$0xff] }
 0x1c5   : > { %v789_v7 = vadd.f32 %v630_v5, %v468_v1  ;;  %v821_v8 = vadd.f32 %v726_v6, %v500_v2  ;;  %v632_v9 = vpop.f32.mrb[17].mxu0  ;;  %v728_v10 = vpop.f32.mrb[17].mxu1  ;;  %v511_v0 = vld [vmem:[%s1713_s27 + $0x1d8] sm:$0xff] }
 0x1c6   : > { %v790_v11 = vadd.f32 %v632_v9, %v469_v3  ;;  %v822_v12 = vadd.f32 %v728_v10, %v501_v4  ;;  %v480_v9 = vld [vmem:[%s1713_s27 + $0xe0] sm:$0xff] }
 0x1c7   : > { %853 = vst [vmem:[%s1713_s27 + $0x80] sm:$0xff] %v789_v7  ;;  %885 = vst [vmem:[%s1713_s27 + $0x180] sm:$0xff] %v821_v8  ;;  %v512_v10 = vld [vmem:[%s1713_s27 + $0x1e0] sm:$0xff] }
 0x1c8   : > { %854 = vst [vmem:[%s1713_s27 + $0x88] sm:$0xff] %v790_v11  ;;  %886 = vst [vmem:[%s1713_s27 + $0x188] sm:$0xff] %v822_v12  ;;  %v636_v17 = vpop.f32.mrb[18].mxu0  ;;  %v732_v18 = vpop.f32.mrb[18].mxu1  ;;  %v481_v11 = vld [vmem:[%s1713_s27 + $0xe8] sm:$0xff] }
 0x1c9   : > { %v791_v19 = vadd.f32 %v636_v17, %v470_v13  ;;  %v823_v20 = vadd.f32 %v732_v18, %v502_v14  ;;  %v638_v21 = vpop.f32.mrb[19].mxu0  ;;  %v734_v22 = vpop.f32.mrb[19].mxu1  ;;  %v513_v12 = vld [vmem:[%s1713_s27 + $0x1e8] sm:$0xff] }
 0x1ca   : > { %v792_v23 = vadd.f32 %v638_v21, %v471_v15  ;;  %v824_v24 = vadd.f32 %v734_v22, %v503_v16  ;;  %v482_v21 = vld [vmem:[%s1713_s27 + $0xf0] sm:$0xff] }
 0x1cb   : > { %855 = vst [vmem:[%s1713_s27 + $0x90] sm:$0xff] %v791_v19  ;;  %887 = vst [vmem:[%s1713_s27 + $0x190] sm:$0xff] %v823_v20  ;;  %v514_v22 = vld [vmem:[%s1713_s27 + $0x1f0] sm:$0xff] }
 0x1cc   : > { %856 = vst [vmem:[%s1713_s27 + $0x98] sm:$0xff] %v792_v23  ;;  %888 = vst [vmem:[%s1713_s27 + $0x198] sm:$0xff] %v824_v24  ;;  %v642_v29 = vpop.f32.mrb[20].mxu0  ;;  %v738_v30 = vpop.f32.mrb[20].mxu1  ;;  %v483_v23 = vld [vmem:[%s1713_s27 + $0xf8] sm:$0xff] }
 0x1cd   : > { %v793_v31 = vadd.f32 %v642_v29, %v472_v25  ;;  %v825_v32 = vadd.f32 %v738_v30, %v504_v26  ;;  %v644_v33 = vpop.f32.mrb[21].mxu0  ;;  %v740_v34 = vpop.f32.mrb[21].mxu1  ;;  %v515_v24 = vld [vmem:[%s1713_s27 + $0x1f8] sm:$0xff] }
 0x1ce   : > { %v794_v35 = vadd.f32 %v644_v33, %v473_v27  ;;  %v826_v36 = vadd.f32 %v740_v34, %v505_v28 }
 0x1cf   : > { %857 = vst [vmem:[%s1713_s27 + $0xa0] sm:$0xff] %v793_v31  ;;  %889 = vst [vmem:[%s1713_s27 + $0x1a0] sm:$0xff] %v825_v32 }
 0x1d0   : > { %858 = vst [vmem:[%s1713_s27 + $0xa8] sm:$0xff] %v794_v35  ;;  %890 = vst [vmem:[%s1713_s27 + $0x1a8] sm:$0xff] %v826_v36  ;;  %v648_v41 = vpop.f32.mrb[22].mxu0  ;;  %v744_v42 = vpop.f32.mrb[22].mxu1 }
 0x1d1   : > { %v795_v43 = vadd.f32 %v648_v41, %v474_v37  ;;  %v827_v44 = vadd.f32 %v744_v42, %v506_v38  ;;  %v650_v45 = vpop.f32.mrb[23].mxu0  ;;  %v746_v46 = vpop.f32.mrb[23].mxu1 }
 0x1d2   : > { %v796_v47 = vadd.f32 %v650_v45, %v475_v39  ;;  %v828_v48 = vadd.f32 %v746_v46, %v507_v40 }
 0x1d3   : > { %859 = vst [vmem:[%s1713_s27 + $0xb0] sm:$0xff] %v795_v43  ;;  %891 = vst [vmem:[%s1713_s27 + $0x1b0] sm:$0xff] %v827_v44 }
 0x1d4   : > { %860 = vst [vmem:[%s1713_s27 + $0xb8] sm:$0xff] %v796_v47  ;;  %892 = vst [vmem:[%s1713_s27 + $0x1b8] sm:$0xff] %v828_v48  ;;  %v654_v53 = vpop.f32.mrb[24].mxu0  ;;  %v750_v54 = vpop.f32.mrb[24].mxu1 }
 0x1d5   : > { %v797_v55 = vadd.f32 %v654_v53, %v476_v49  ;;  %v829_v56 = vadd.f32 %v750_v54, %v508_v50  ;;  %v656_v57 = vpop.f32.mrb[25].mxu0  ;;  %v752_v58 = vpop.f32.mrb[25].mxu1 }
 0x1d6   : > { %v798_v59 = vadd.f32 %v656_v57, %v477_v51  ;;  %v830_v60 = vadd.f32 %v752_v58, %v509_v52 }
 0x1d7   : > { %861 = vst [vmem:[%s1713_s27 + $0xc0] sm:$0xff] %v797_v55  ;;  %893 = vst [vmem:[%s1713_s27 + $0x1c0] sm:$0xff] %v829_v56 }
 0x1d8   : > { %862 = vst [vmem:[%s1713_s27 + $0xc8] sm:$0xff] %v798_v59  ;;  %894 = vst [vmem:[%s1713_s27 + $0x1c8] sm:$0xff] %v830_v60  ;;  %v660_v1 = vpop.f32.mrb[26].mxu0  ;;  %v756_v2 = vpop.f32.mrb[26].mxu1 }
 0x1d9   : > { %v799_v3 = vadd.f32 %v660_v1, %v478_v61  ;;  %v831_v4 = vadd.f32 %v756_v2, %v510_v62  ;;  %v662_v5 = vpop.f32.mrb[27].mxu0  ;;  %v758_v6 = vpop.f32.mrb[27].mxu1 }
 0x1da   : > { %v800_v7 = vadd.f32 %v662_v5, %v479_v63  ;;  %v832_v8 = vadd.f32 %v758_v6, %v511_v0 }
 0x1db   : > { %863 = vst [vmem:[%s1713_s27 + $0xd0] sm:$0xff] %v799_v3  ;;  %895 = vst [vmem:[%s1713_s27 + $0x1d0] sm:$0xff] %v831_v4 }
 0x1dc   : > { %864 = vst [vmem:[%s1713_s27 + $0xd8] sm:$0xff] %v800_v7  ;;  %896 = vst [vmem:[%s1713_s27 + $0x1d8] sm:$0xff] %v832_v8  ;;  %v666_v13 = vpop.f32.mrb[28].mxu0  ;;  %v762_v14 = vpop.f32.mrb[28].mxu1 }
 0x1dd   : > { %v801_v15 = vadd.f32 %v666_v13, %v480_v9  ;;  %v833_v16 = vadd.f32 %v762_v14, %v512_v10  ;;  %v668_v17 = vpop.f32.mrb[29].mxu0  ;;  %v764_v18 = vpop.f32.mrb[29].mxu1 }
 0x1de   : > { %v802_v19 = vadd.f32 %v668_v17, %v481_v11  ;;  %v834_v20 = vadd.f32 %v764_v18, %v513_v12 }
 0x1df   : > { %865 = vst [vmem:[%s1713_s27 + $0xe0] sm:$0xff] %v801_v15  ;;  %897 = vst [vmem:[%s1713_s27 + $0x1e0] sm:$0xff] %v833_v16 }
 0x1e0   : > { %866 = vst [vmem:[%s1713_s27 + $0xe8] sm:$0xff] %v802_v19  ;;  %898 = vst [vmem:[%s1713_s27 + $0x1e8] sm:$0xff] %v834_v20  ;;  %v672_v25 = vpop.f32.mrb[30].mxu0  ;;  %v768_v26 = vpop.f32.mrb[30].mxu1 }
 0x1e1   : > { %v803_v27 = vadd.f32 %v672_v25, %v482_v21  ;;  %v835_v28 = vadd.f32 %v768_v26, %v514_v22  ;;  %v674_v29 = vpop.f32.mrb[31].mxu0  ;;  %v770_v30 = vpop.f32.mrb[31].mxu1 }
 0x1e2   : > { %v804_v31 = vadd.f32 %v674_v29, %v483_v23  ;;  %v836_v32 = vadd.f32 %v770_v30, %v515_v24 }
 0x1e3   : > { %867 = vst [vmem:[%s1713_s27 + $0xf0] sm:$0xff] %v803_v27  ;;  %899 = vst [vmem:[%s1713_s27 + $0x1f0] sm:$0xff] %v835_v28 }
 0x1e4   : > { %868 = vst [vmem:[%s1713_s27 + $0xf8] sm:$0xff] %v804_v31  ;;  %900 = vst [vmem:[%s1713_s27 + $0x1f8] sm:$0xff] %v836_v32 }
 0x1e5   : > { %1355 = shalt.err (!%p1352_p9)
}
 0x1e6   : > { %s1356_s25 = scalar_lea.hbm %s2101_s26, 8192  ;;  %s1360_s21 = scalar_lea.hbm %s2174_s2, 16384 }
 0x1e7   : > { %p1357_p0 = scmp.ne.s32.totalorder %s2101_s26, %s1356_s25  ;;  %p1361_p10 = scmp.lt.u32.totalorder %s2101_s26, %s2174_s2 }
 0x1e8   : > { %p1362_p7 = scmp.lt.u32.totalorder %s1360_s21, %s1356_s25  ;;  %p1364_p3 = scmp.lt.u32.totalorder %s1356_s25, %s2101_s26 }
 0x1e9   : > { %p1358_p6 = pnand %p1357_p0, %p2201_p5 }
 0x1ea   : > { %p1363_p4 = por %p1362_p7, %p1361_p10 }
 0x1eb   : > { %p1359_p8 = pneg %p1358_p6 }
 0x1ec   : > { %p1365_p1 = por %p1364_p3, %p1363_p4 }
 0x1ee   : > { %p1366_p11 = pnand %p1365_p1, %p1359_p8 }
 0x1f0   : > { %1369 = shalt.err (!%p1366_p11)
}
 0x1f1   : > { %s1477_s5 = smov 256   ;;  %s1478_s7 = smov 16  }
 0x1f2   : > { %1173 = dma.vmem_to_hbm [thread:$0]  (%p2201_p5), %s2103_s28, 8192, %s2101_s26, %s2111_s22, %s1477_s5, %s1477_s5, %s1478_s7  }
 0x1f3 PF: > { %s2202_s29 = sld [smem:[#allocation17_spill]]  ;;  %p1187_p13 = scmp.ge.s32.totalorder %s1468_s19, 2 }
 0x1f4   : > { %s935_s14 = sand.u32 1, %s1428_s9  }
 0x1f5   : > { %s936_s6 = scalar_lea.sflag [#allocation4], %s935_s14 }
 0x1f9   : > { %p2203_p12 = scmp.ne.s32.totalorder %s2202_s29, 0 }
 0x1fb   : > { %p1183_p2 = pnand %p1187_p13, %p2203_p12 }
 0x1fd   : > { %1423 = dma.done.wait (!%p1183_p2), %s936_s6, 8192  }
 0x1fe   : > { %1425 = vsyncadd (!%p1183_p2), %s936_s6, 4294959104  ;;  %s21_s19 = sadd.s32 1, %s1468_s19   ;;  %s2204_s27 = sld [smem:[#allocation11_spill]] }
 0x1ff   : > { %p18_p9 = scmp.ge.s32.totalorder %s21_s19, 10   ;;  %s2205_s11 = sld [smem:[#allocation15_spill]] }
 0x200   : > { %s2206_s3 = sld [smem:[#allocation12_spill]]  ;;  %s2207_s14 = sld [smem:[#allocation16_spill]] }
 0x201   : > { %s2208_s28 = sld [smem:[#allocation13_spill]]  ;;  %s2209_s30 = sld [smem:[#allocation14_spill]] }
 0x202   : > { %s2210_s9 = smov %s1432_s10  ;;  %s2212_s12 = smov %s1444_s13 }
 0x203   : > { %s2214_s15 = smov %s1460_s17  ;;  %s2215_s16 = smov %s1464_s18 }
 0x204   : > { %s2211_s10 = smov %s2204_s27  ;;  %20 = sbr.rel (!%p18_p9) target bundleno = 13 (0xd), region = 90 }
 0x206   : > { %s2213_s13 = smov %s2206_s3 }
 0x207   : > { %s2216_s17 = smov %s2208_s28  ;;  %s2217_s18 = smov %s2209_s30 }
 0x20b   :  { %941 = vsyncpa [#allocation3], 1 }
 0x20c   :  { %943 = vsyncpa [#allocation3 + $0x1], 1 }
 0x20d   :  { %944 = vsyncpa [#allocation6], 1 }
 0x20e   :  { %946 = vsyncpa [#allocation6 + $0x1], 1 }
 0x20f   :  { %947 = vsyncpa [#allocation4], 1 }
 0x210   :  { %949 = vsyncpa [#allocation4 + $0x1], 1 }

</bundles_post_ra>
